<compile_context>
chip_gen: v6e
topology: v6e:2x2x1
jax: 0.10.0
libtpu: 0.0.40
codegen_flags: <defaults>
</compile_context>

<pallas_src>
import jax
import jax.numpy as jnp
from jax.experimental import pallas as pl
from jax.experimental.pallas import tpu as pltpu

BN_EPS = 1e-5


def conv1x1_bn_kernel(x_ref, w_ref, gamma_ref, beta_ref, o_ref):
    # 1x1 conv with stride 1 == channel matmul on the MXU (f32 accumulation).
    y = jnp.dot(w_ref[...], x_ref[...], preferred_element_type=jnp.float32)  # (bc, M)

    # BatchNorm2d train-mode stats (biased variance), computed in a single pass so
    # only `y` is live as a full-size tensor (safe here: activations are ~zero-mean,
    # so E[y^2] - mean^2 has no cancellation issue).
    m = y.shape[1]
    inv_m = 1.0 / m
    mean = jnp.sum(y, axis=1, keepdims=True) * inv_m           # (bc, 1)
    mean_sq = jnp.sum(y * y, axis=1, keepdims=True) * inv_m    # (bc, 1)
    var = mean_sq - mean * mean
    inv = jax.lax.rsqrt(var + BN_EPS)

    # Fused affine: (y - mean) * inv * gamma + beta  ==  y * scale + shift
    scale = inv * gamma_ref[...]               # (bc, 1)
    shift = beta_ref[...] - mean * scale       # (bc, 1)
    o_ref[...] = (y * scale + shift).astype(o_ref.dtype)


def conv2d_1x1_batchnorm(x_nchw, weight_oihw, gamma, beta, *, block_cout=128):
    """x_nchw: (N, Cin, H, W); weight_oihw: (Cout, Cin, 1, 1); gamma/beta: (Cout,)."""
    N, Cin, H, W = x_nchw.shape
    Cout = weight_oihw.shape[0]
    M = N * H * W

    # Transpose-free views (N=1 case from the module spec). General-N fallback keeps
    # semantics but pays one transpose.
    if N == 1:
        x2d = x_nchw.reshape(Cin, M)                         # contiguous view
    else:
        x2d = jnp.moveaxis(x_nchw, 1, 0).reshape(Cin, M)
    w2d = weight_oihw.reshape(Cout, Cin)                     # contiguous view
    g2d = gamma.reshape(Cout, 1).astype(jnp.float32)
    b2d = beta.reshape(Cout, 1).astype(jnp.float32)

    bc = block_cout if (Cout % block_cout == 0) else Cout
    grid = (Cout // bc,)

    out2d = pl.pallas_call(
        conv1x1_bn_kernel,
        out_shape=jax.ShapeDtypeStruct((Cout, M), x_nchw.dtype),
        grid=grid,
        in_specs=[
            pl.BlockSpec((Cin, M), lambda i: (0, 0)),     # X: shared by all Cout blocks
            pl.BlockSpec((bc, Cin), lambda i: (i, 0)),    # W: per-Cout block
            pl.BlockSpec((bc, 1), lambda i: (i, 0)),      # gamma
            pl.BlockSpec((bc, 1), lambda i: (i, 0)),      # beta
        ],
        out_specs=pl.BlockSpec((bc, M), lambda i: (i, 0)),
        compiler_params=pltpu.CompilerParams(
            dimension_semantics=("parallel",),            # Cout blocks are independent
            vmem_limit_bytes=16 << 20,                    # working set ~3-4 MiB; leave headroom on v7x
        ),
    )(x2d, w2d, g2d, b2d)

    # (Cout, M) -> NCHW (pure reshape for N=1).
    if N == 1:
        return out2d.reshape(1, Cout, H, W)
    return jnp.moveaxis(out2d.reshape(Cout, N, H, W), 0, 1)


def reference(x_nchw, weight_oihw, gamma, beta):
    """Pure-JAX reference (two-pass BN) for correctness checking."""
    N, Cin, H, W = x_nchw.shape
    Cout = weight_oihw.shape[0]
    x2d = jnp.transpose(x_nchw, (0, 2, 3, 1)).reshape(-1, Cin)
    y = x2d @ weight_oihw.reshape(Cout, Cin).T                            # (M, Cout)
    mean = jnp.mean(y, axis=0, keepdims=True)
    var = jnp.mean((y - mean) ** 2, axis=0, keepdims=True)
    out = (y - mean) * jax.lax.rsqrt(var + BN_EPS) * gamma[None, :] + beta[None, :]
    return jnp.transpose(out.reshape(N, H, W, Cout), (0, 3, 1, 2))


if __name__ == "__main__":
    key = jax.random.PRNGKey(0)
    kx, kw = jax.random.split(key)

    # Shapes implied by the module's forward: x210 is [1, 1024, 14, 14].
    N, Cin, Cout, H, W = 1, 1024, 256, 14, 14

    x = jax.random.normal(kx, (N, Cin, H, W), dtype=jnp.float32)
    # Deterministic synthetic conv weight (Conv2d(1024, 256, 1, bias=False)).
    conv_w = jax.random.normal(kw, (Cout, Cin, 1, 1), dtype=jnp.float32) * 0.02
    # BatchNorm2d default init: weight=1, bias=0.
    gamma = jnp.ones((Cout,), dtype=jnp.float32)
    beta = jnp.zeros((Cout,), dtype=jnp.float32)

    out = conv2d_1x1_batchnorm(x, conv_w, gamma, beta)
    out = jax.block_until_ready(out)

    ref = reference(x, conv_w, gamma, beta)
    assert out.shape == (N, Cout, H, W), out.shape
    assert jnp.allclose(out, ref, atol=1e-3, rtol=1e-3), float(jnp.max(jnp.abs(out - ref)))

    print("KERNEL_OK")
</pallas_src>

<mosaic_0001>
module attributes {stable_mosaic.version = 11 : i64} {
  func.func @conv1x1_bn_kernel(%arg0: i32, %arg1: memref<1024x196xf32, #tpu.memory_space<vmem>>, %arg2: memref<128x1024xf32, #tpu.memory_space<vmem>>, %arg3: memref<128x1xf32, #tpu.memory_space<vmem>>, %arg4: memref<128x1xf32, #tpu.memory_space<vmem>>, %arg5: memref<128x196xf32, #tpu.memory_space<vmem>>) attributes {dimension_semantics = [#tpu.dimension_semantics<parallel>], iteration_bounds = array<i64: 2>, scalar_prefetch = 0 : i64, scratch_operands = 0 : i64, tpu.core_type = #tpu.core_type<tc>, window_params = [{pipeline_mode = #tpu.pipeline_mode<synchronous>, transform_indices = @transform_0, window_bounds = array<i64: 1024, 196>}, {transform_indices = @transform_1, window_bounds = array<i64: 128, 1024>}, {transform_indices = @transform_2, window_bounds = array<i64: 128, 1>}, {transform_indices = @transform_3, window_bounds = array<i64: 128, 1>}, {transform_indices = @transform_4, window_bounds = array<i64: 128, 196>}]} {
    %c0 = arith.constant 0 : index
    %c0_0 = arith.constant 0 : index
    %0 = vector.load %arg2[%c0, %c0_0] : memref<128x1024xf32, #tpu.memory_space<vmem>>, vector<128x1024xf32>
    %c0_1 = arith.constant 0 : index
    %c0_2 = arith.constant 0 : index
    %1 = vector.load %arg1[%c0_1, %c0_2] : memref<1024x196xf32, #tpu.memory_space<vmem>>, vector<1024x196xf32>
    %cst = arith.constant dense<0.000000e+00> : vector<128x196xf32>
    %2 = tpu.matmul %0, %1, %cst {dimension_numbers = #tpu.dot_dimension_numbers<[1], [0], [0], [1], [0, 0, 1, 1], [], []>} : vector<128x1024xf32>, vector<1024x196xf32>, vector<128x196xf32> -> vector<128x196xf32>
    %cst_3 = arith.constant dense<0.000000e+00> : vector<128xf32>
    %3 = vector.multi_reduction <add>, %2, %cst_3 [1] : vector<128x196xf32> to vector<128xf32>
    %4 = vector.shape_cast %3 : vector<128xf32> to vector<128x1xf32>
    %cst_4 = arith.constant 0.00510204071 : f32
    %5 = vector.broadcast %cst_4 : f32 to vector<128x1xf32>
    %6 = arith.mulf %4, %5 : vector<128x1xf32>
    %7 = arith.mulf %2, %2 : vector<128x196xf32>
    %cst_5 = arith.constant dense<0.000000e+00> : vector<128xf32>
    %8 = vector.multi_reduction <add>, %7, %cst_5 [1] : vector<128x196xf32> to vector<128xf32>
    %9 = vector.shape_cast %8 : vector<128xf32> to vector<128x1xf32>
    %cst_6 = arith.constant 0.00510204071 : f32
    %10 = vector.broadcast %cst_6 : f32 to vector<128x1xf32>
    %11 = arith.mulf %9, %10 : vector<128x1xf32>
    %12 = arith.mulf %6, %6 : vector<128x1xf32>
    %13 = arith.subf %11, %12 : vector<128x1xf32>
    %cst_7 = arith.constant 9.99999974E-6 : f32
    %14 = vector.broadcast %cst_7 : f32 to vector<128x1xf32>
    %15 = arith.addf %13, %14 : vector<128x1xf32>
    %16 = math.rsqrt %15 : vector<128x1xf32>
    %c0_8 = arith.constant 0 : index
    %c0_9 = arith.constant 0 : index
    %17 = vector.load %arg3[%c0_8, %c0_9] : memref<128x1xf32, #tpu.memory_space<vmem>>, vector<128x1xf32>
    %18 = arith.mulf %16, %17 : vector<128x1xf32>
    %c0_10 = arith.constant 0 : index
    %c0_11 = arith.constant 0 : index
    %19 = vector.load %arg4[%c0_10, %c0_11] : memref<128x1xf32, #tpu.memory_space<vmem>>, vector<128x1xf32>
    %20 = arith.mulf %6, %18 : vector<128x1xf32>
    %21 = arith.subf %19, %20 : vector<128x1xf32>
    %22 = vector.broadcast %18 : vector<128x1xf32> to vector<128x196xf32>
    %23 = arith.mulf %2, %22 : vector<128x196xf32>
    %24 = vector.broadcast %21 : vector<128x1xf32> to vector<128x196xf32>
    %25 = arith.addf %23, %24 : vector<128x196xf32>
    %c0_12 = arith.constant 0 : index
    %c0_13 = arith.constant 0 : index
    %26 = vector.load %arg5[%c0_12, %c0_13] : memref<128x196xf32, #tpu.memory_space<vmem>>, vector<128x196xf32>
    tpu.vector_store %arg5[%c0_12, %c0_13], %25 {strides = array<i32>} : memref<128x196xf32, #tpu.memory_space<vmem>>, vector<128x196xf32>,
    return
  }
  func.func @transform_0(%arg0: i32) -> (i32, i32) {
    %c0_i32 = arith.constant 0 : i32
    %c0_i32_0 = arith.constant 0 : i32
    %c0_i32_1 = arith.constant 0 : i32
    return %c0_i32, %c0_i32_0 : i32, i32
  }
  func.func @transform_1(%arg0: i32) -> (i32, i32) {
    %c0_i32 = arith.constant 0 : i32
    %c0_i32_0 = arith.constant 0 : i32
    return %arg0, %c0_i32 : i32, i32
  }
  func.func @transform_2(%arg0: i32) -> (i32, i32) {
    %c0_i32 = arith.constant 0 : i32
    %c0_i32_0 = arith.constant 0 : i32
    return %arg0, %c0_i32 : i32, i32
  }
  func.func @transform_3(%arg0: i32) -> (i32, i32) {
    %c0_i32 = arith.constant 0 : i32
    %c0_i32_0 = arith.constant 0 : i32
    return %arg0, %c0_i32 : i32, i32
  }
  func.func @transform_4(%arg0: i32) -> (i32, i32) {
    %c0_i32 = arith.constant 0 : i32
    %c0_i32_0 = arith.constant 0 : i32
    return %arg0, %c0_i32 : i32, i32
  }
}

</mosaic_0001>

<bundles_post_ra>
// kernel: tpu_custom_call.1
= control target key start
LH: loop header
LB: loop body
LE: loop exit
PB: predicated region body
PF: predicated region fallthrough
CT: control target
= control target key end

     0   :  { %s2049_s15 = smov 0   ;;  %s3535_s0 = inlined_call_operand.vmem [shape: f32[1024,196], index: 0, kind: input, shape index: {}]   ;;  %s3536_s1 = inlined_call_operand.vmem [shape: f32[256,1024], index: 1, kind: input, shape index: {}]   ;;  %s3537_s2 = inlined_call_operand.vmem [shape: f32[256,1], index: 2, kind: input, shape index: {}]   ;;  %s3538_s3 = inlined_call_operand.vmem [shape: f32[256,1], index: 3, kind: input, shape index: {}]   ;;  %s3539_s4 = inlined_call_operand.vmem [shape: f32[256,196], index: 4, kind: output, shape index: {}]  }
   0x1 LB: > { %s1953_s16 = sadd.s32 4294967295, %s2021_s15   ;;  %p1957_p0 = scmp.ge.s32.totalorder %s2021_s15, 1  ;;  %s2021_s15 = sphi %s2049_s15, %s14_s15  }
   0x2   : > { %p186_p1 = scmp.lt.s32.totalorder %s2021_s15, 3 }
   0x4   : > { %p187_p2 = pnand %p1957_p0, %p186_p1 }
   0x6   : > { %190 = sbr.rel (%p187_p2) target bundleno = 743 (0x2e7), region = 36 }
   0xb   : > { %v409_v0 = vld [vmem:[%s3535_s0 + $0xf8] sm:$0xff]  ;;  %v408_v2 = vld [vmem:[%s3535_s0 + $0xf0] sm:$0xff]  ;;  %v407_v4 = vld [vmem:[%s3535_s0 + $0xe8] sm:$0xff]  ;;  %s2341_s11 = sshll.u32 %s1953_s16, 4  ;;  %vm1278_vm0 = vcmask 556032  }
   0xc   : > { %v473_v1 = vld [vmem:[%s3535_s0 + $0x2f8] sm:$0xff]  ;;  %634 = vmatprep.subr.mxu0 %v409_v0  ;;  %v472_v3 = vld [vmem:[%s3535_s0 + $0x2f0] sm:$0xff]  ;;  %v471_v5 = vld [vmem:[%s3535_s0 + $0x2e8] sm:$0xff]  ;;  %p225_p3 = scmp.lt.s32.totalorder %s2341_s11, 31 }
   0xd   : > { %795 = vmatprep.subr.mxu1 %v473_v1  ;;  %635 = vmatpush1.msra.mxu0 %v408_v2  ;;  %v406_v6 = vld [vmem:[%s3535_s0 + $0xe0] sm:$0xff]  ;;  %v405_v8 = vld [vmem:[%s3535_s0 + $0xd8] sm:$0xff]  ;;  %v404_v10 = vld [vmem:[%s3535_s0 + $0xd0] sm:$0xff] }
   0xe   : > { %796 = vmatpush1.msra.mxu1 %v472_v3  ;;  %v470_v7 = vld [vmem:[%s3535_s0 + $0x2e0] sm:$0xff]  ;;  %636 = vmatprep.subr.mxu0 %v407_v4  ;;  %v469_v9 = vld [vmem:[%s3535_s0 + $0x2d8] sm:$0xff]  ;;  %v468_v11 = vld [vmem:[%s3535_s0 + $0x2d0] sm:$0xff]  ;;  %s3551_s11 = smov (!%p225_p3, %s2341_s11), 31 }
   0xf   : > { %797 = vmatprep.subr.mxu1 %v471_v5  ;;  %637 = vmatpush1.msra.mxu0 %v406_v6  ;;  %v403_v12 = vld [vmem:[%s3535_s0 + $0xc8] sm:$0xff]  ;;  %v402_v14 = vld [vmem:[%s3535_s0 + $0xc0] sm:$0xff]  ;;  %v401_v16 = vld [vmem:[%s3535_s0 + $0xb8] sm:$0xff]  ;;  %s1970_s7 = sshll.u32 %s3551_s11, 6  ;;  %s1971_s22 = sshll.u32 %s3551_s11, 4 }
  0x10   : > { %798 = vmatpush1.msra.mxu1 %v470_v7  ;;  %v467_v13 = vld [vmem:[%s3535_s0 + $0x2c8] sm:$0xff]  ;;  %638 = vmatprep.subr.mxu0 %v405_v8  ;;  %v466_v15 = vld [vmem:[%s3535_s0 + $0x2c0] sm:$0xff]  ;;  %v465_v17 = vld [vmem:[%s3535_s0 + $0x2b8] sm:$0xff]  ;;  %s2437_s24 = scalar_lea.vmem %s3536_s1, %s1970_s7  ;;  %s3454_s26 = scalar_lea.vmem %s3539_s4, %s1971_s22 }
  0x11   : > { %799 = vmatprep.subr.mxu1 %v469_v9  ;;  %639 = vmatpush1.msra.mxu0 %v404_v10  ;;  %v400_v18 = vld [vmem:[%s3535_s0 + $0xb0] sm:$0xff]  ;;  %v399_v20 = vld [vmem:[%s3535_s0 + $0xa8] sm:$0xff]  ;;  %v398_v22 = vld [vmem:[%s3535_s0 + $0xa0] sm:$0xff] }
  0x12   : > { %800 = vmatpush1.msra.mxu1 %v468_v11  ;;  %640 = vmatprep.subr.mxu0 %v403_v12  ;;  %v464_v19 = vld [vmem:[%s3535_s0 + $0x2b0] sm:$0xff]  ;;  %v463_v21 = vld [vmem:[%s3535_s0 + $0x2a8] sm:$0xff]  ;;  %v462_v23 = vld [vmem:[%s3535_s0 + $0x2a0] sm:$0xff] }
  0x13   : > { %801 = vmatprep.subr.mxu1 %v467_v13  ;;  %641 = vmatpush1.msra.mxu0 %v402_v14  ;;  %v397_v24 = vld [vmem:[%s3535_s0 + $0x98] sm:$0xff]  ;;  %v396_v26 = vld [vmem:[%s3535_s0 + $0x90] sm:$0xff]  ;;  %v395_v28 = vld [vmem:[%s3535_s0 + $0x88] sm:$0xff] }
  0x14   : > { %802 = vmatpush1.msra.mxu1 %v466_v15  ;;  %642 = vmatprep.subr.mxu0 %v401_v16  ;;  %v461_v25 = vld [vmem:[%s3535_s0 + $0x298] sm:$0xff]  ;;  %v460_v27 = vld [vmem:[%s3535_s0 + $0x290] sm:$0xff]  ;;  %v459_v29 = vld [vmem:[%s3535_s0 + $0x288] sm:$0xff] }
  0x15   : > { %803 = vmatprep.subr.mxu1 %v465_v17  ;;  %643 = vmatpush1.msra.mxu0 %v400_v18  ;;  %v394_v30 = vld [vmem:[%s3535_s0 + $0x80] sm:$0xff]  ;;  %v393_v32 = vld [vmem:[%s3535_s0 + $0x78] sm:$0xff]  ;;  %v392_v34 = vld [vmem:[%s3535_s0 + $0x70] sm:$0xff] }
  0x16   : > { %804 = vmatpush1.msra.mxu1 %v464_v19  ;;  %644 = vmatprep.subr.mxu0 %v399_v20  ;;  %v458_v31 = vld [vmem:[%s3535_s0 + $0x280] sm:$0xff]  ;;  %v457_v33 = vld [vmem:[%s3535_s0 + $0x278] sm:$0xff]  ;;  %v456_v35 = vld [vmem:[%s3535_s0 + $0x270] sm:$0xff] }
  0x17   : > { %805 = vmatprep.subr.mxu1 %v463_v21  ;;  %645 = vmatpush1.msra.mxu0 %v398_v22  ;;  %v391_v36 = vld [vmem:[%s3535_s0 + $0x68] sm:$0xff]  ;;  %v390_v38 = vld [vmem:[%s3535_s0 + $0x60] sm:$0xff]  ;;  %v389_v40 = vld [vmem:[%s3535_s0 + $0x58] sm:$0xff] }
  0x18   : > { %806 = vmatpush1.msra.mxu1 %v462_v23  ;;  %646 = vmatprep.subr.mxu0 %v397_v24  ;;  %v455_v37 = vld [vmem:[%s3535_s0 + $0x268] sm:$0xff]  ;;  %v454_v39 = vld [vmem:[%s3535_s0 + $0x260] sm:$0xff]  ;;  %v453_v41 = vld [vmem:[%s3535_s0 + $0x258] sm:$0xff] }
  0x19   : > { %807 = vmatprep.subr.mxu1 %v461_v25  ;;  %647 = vmatpush1.msra.mxu0 %v396_v26  ;;  %v388_v42 = vld [vmem:[%s3535_s0 + $0x50] sm:$0xff]  ;;  %v387_v44 = vld [vmem:[%s3535_s0 + $0x48] sm:$0xff]  ;;  %v386_v46 = vld [vmem:[%s3535_s0 + $0x40] sm:$0xff] }
  0x1a   : > { %808 = vmatpush1.msra.mxu1 %v460_v27  ;;  %648 = vmatprep.subr.mxu0 %v395_v28  ;;  %v452_v43 = vld [vmem:[%s3535_s0 + $0x250] sm:$0xff]  ;;  %v451_v45 = vld [vmem:[%s3535_s0 + $0x248] sm:$0xff]  ;;  %v450_v47 = vld [vmem:[%s3535_s0 + $0x240] sm:$0xff] }
  0x1b   : > { %809 = vmatprep.subr.mxu1 %v459_v29  ;;  %649 = vmatpush1.msra.mxu0 %v394_v30  ;;  %v385_v48 = vld [vmem:[%s3535_s0 + $0x38] sm:$0xff]  ;;  %v384_v50 = vld [vmem:[%s3535_s0 + $0x30] sm:$0xff]  ;;  %v383_v52 = vld [vmem:[%s3535_s0 + $0x28] sm:$0xff] }
  0x1c   : > { %810 = vmatpush1.msra.mxu1 %v458_v31  ;;  %650 = vmatprep.subr.mxu0 %v393_v32  ;;  %v449_v49 = vld [vmem:[%s3535_s0 + $0x238] sm:$0xff]  ;;  %v448_v51 = vld [vmem:[%s3535_s0 + $0x230] sm:$0xff]  ;;  %v447_v53 = vld [vmem:[%s3535_s0 + $0x228] sm:$0xff] }
  0x1d   : > { %811 = vmatprep.subr.mxu1 %v457_v33  ;;  %651 = vmatpush1.msra.mxu0 %v392_v34  ;;  %v382_v54 = vld [vmem:[%s3535_s0 + $0x20] sm:$0xff]  ;;  %v381_v56 = vld [vmem:[%s3535_s0 + $0x18] sm:$0xff]  ;;  %v380_v58 = vld [vmem:[%s3535_s0 + $0x10] sm:$0xff] }
  0x1e   : > { %812 = vmatpush1.msra.mxu1 %v456_v35  ;;  %652 = vmatprep.subr.mxu0 %v391_v36  ;;  %v446_v55 = vld [vmem:[%s3535_s0 + $0x220] sm:$0xff]  ;;  %v445_v57 = vld [vmem:[%s3535_s0 + $0x218] sm:$0xff]  ;;  %v444_v59 = vld [vmem:[%s3535_s0 + $0x210] sm:$0xff] }
  0x1f   : > { %813 = vmatprep.subr.mxu1 %v455_v37  ;;  %653 = vmatpush1.msra.mxu0 %v390_v38  ;;  %v379_v60 = vld [vmem:[%s3535_s0 + $0x8] sm:$0xff]  ;;  %v378_v62 = vld [vmem:[%s3535_s0] sm:$0xff]  ;;  %v441_v0 = vld [vmem:[%s3535_s0 + $0x1f8] sm:$0xff] }
  0x20   : > { %814 = vmatpush1.msra.mxu1 %v454_v39  ;;  %654 = vmatprep.subr.mxu0 %v389_v40  ;;  %v443_v61 = vld [vmem:[%s3535_s0 + $0x208] sm:$0xff]  ;;  %v442_v63 = vld [vmem:[%s3535_s0 + $0x200] sm:$0xff]  ;;  %v505_v1 = vld [vmem:[%s3535_s0 + $0x3f8] sm:$0xff] }
  0x21   : > { %815 = vmatprep.subr.mxu1 %v453_v41  ;;  %655 = vmatpush1.msra.mxu0 %v388_v42  ;;  %v440_v2 = vld [vmem:[%s3535_s0 + $0x1f0] sm:$0xff]  ;;  %v439_v4 = vld [vmem:[%s3535_s0 + $0x1e8] sm:$0xff]  ;;  %v438_v6 = vld [vmem:[%s3535_s0 + $0x1e0] sm:$0xff] }
  0x22   : > { %816 = vmatpush1.msra.mxu1 %v452_v43  ;;  %656 = vmatprep.subr.mxu0 %v387_v44  ;;  %v504_v3 = vld [vmem:[%s3535_s0 + $0x3f0] sm:$0xff]  ;;  %v503_v5 = vld [vmem:[%s3535_s0 + $0x3e8] sm:$0xff]  ;;  %v502_v7 = vld [vmem:[%s3535_s0 + $0x3e0] sm:$0xff] }
  0x23   : > { %817 = vmatprep.subr.mxu1 %v451_v45  ;;  %657 = vmatpush1.msra.mxu0 %v386_v46  ;;  %v437_v8 = vld [vmem:[%s3535_s0 + $0x1d8] sm:$0xff]  ;;  %v436_v10 = vld [vmem:[%s3535_s0 + $0x1d0] sm:$0xff]  ;;  %v435_v12 = vld [vmem:[%s3535_s0 + $0x1c8] sm:$0xff] }
  0x24   : > { %818 = vmatpush1.msra.mxu1 %v450_v47  ;;  %658 = vmatprep.subr.mxu0 %v385_v48  ;;  %v501_v9 = vld [vmem:[%s3535_s0 + $0x3d8] sm:$0xff]  ;;  %v500_v11 = vld [vmem:[%s3535_s0 + $0x3d0] sm:$0xff]  ;;  %v499_v13 = vld [vmem:[%s3535_s0 + $0x3c8] sm:$0xff] }
  0x25   : > { %819 = vmatprep.subr.mxu1 %v449_v49  ;;  %659 = vmatpush1.msra.mxu0 %v384_v50  ;;  %v434_v14 = vld [vmem:[%s3535_s0 + $0x1c0] sm:$0xff]  ;;  %v433_v16 = vld [vmem:[%s3535_s0 + $0x1b8] sm:$0xff]  ;;  %v432_v18 = vld [vmem:[%s3535_s0 + $0x1b0] sm:$0xff] }
  0x26   : > { %820 = vmatpush1.msra.mxu1 %v448_v51  ;;  %660 = vmatprep.subr.mxu0 %v383_v52  ;;  %v498_v15 = vld [vmem:[%s3535_s0 + $0x3c0] sm:$0xff]  ;;  %v497_v17 = vld [vmem:[%s3535_s0 + $0x3b8] sm:$0xff]  ;;  %v496_v19 = vld [vmem:[%s3535_s0 + $0x3b0] sm:$0xff] }
  0x27   : > { %821 = vmatprep.subr.mxu1 %v447_v53  ;;  %661 = vmatpush1.msra.mxu0 %v382_v54  ;;  %v431_v20 = vld [vmem:[%s3535_s0 + $0x1a8] sm:$0xff]  ;;  %v430_v22 = vld [vmem:[%s3535_s0 + $0x1a0] sm:$0xff]  ;;  %v429_v24 = vld [vmem:[%s3535_s0 + $0x198] sm:$0xff] }
  0x28   : > { %822 = vmatpush1.msra.mxu1 %v446_v55  ;;  %662 = vmatprep.subr.mxu0 %v381_v56  ;;  %v495_v21 = vld [vmem:[%s3535_s0 + $0x3a8] sm:$0xff]  ;;  %v494_v23 = vld [vmem:[%s3535_s0 + $0x3a0] sm:$0xff]  ;;  %v493_v25 = vld [vmem:[%s3535_s0 + $0x398] sm:$0xff] }
  0x29   : > { %823 = vmatprep.subr.mxu1 %v445_v57  ;;  %663 = vmatpush1.msra.mxu0 %v380_v58  ;;  %v428_v26 = vld [vmem:[%s3535_s0 + $0x190] sm:$0xff]  ;;  %v427_v28 = vld [vmem:[%s3535_s0 + $0x188] sm:$0xff]  ;;  %v426_v30 = vld [vmem:[%s3535_s0 + $0x180] sm:$0xff] }
  0x2a   : > { %824 = vmatpush1.msra.mxu1 %v444_v59  ;;  %664 = vmatprep.subr.mxu0 %v379_v60  ;;  %v492_v27 = vld [vmem:[%s3535_s0 + $0x390] sm:$0xff]  ;;  %v491_v29 = vld [vmem:[%s3535_s0 + $0x388] sm:$0xff]  ;;  %v490_v31 = vld [vmem:[%s3535_s0 + $0x380] sm:$0xff] }
  0x2b   : > { %825 = vmatprep.subr.mxu1 %v443_v61  ;;  %665 = vmatpush1.msra.mxu0 %v378_v62  ;;  %v425_v32 = vld [vmem:[%s3535_s0 + $0x178] sm:$0xff]  ;;  %v424_v34 = vld [vmem:[%s3535_s0 + $0x170] sm:$0xff]  ;;  %v423_v36 = vld [vmem:[%s3535_s0 + $0x168] sm:$0xff] }
  0x2c   : > { %826 = vmatpush1.msra.mxu1 %v442_v63  ;;  %666 = vmatprep.subr.mxu0 %v441_v0  ;;  %v489_v33 = vld [vmem:[%s3535_s0 + $0x378] sm:$0xff]  ;;  %v488_v35 = vld [vmem:[%s3535_s0 + $0x370] sm:$0xff]  ;;  %v487_v37 = vld [vmem:[%s3535_s0 + $0x368] sm:$0xff] }
  0x2d   : > { %827 = vmatprep.subr.mxu1 %v505_v1  ;;  %667 = vmatpush2.msra.mxu0 %v440_v2  ;;  %v422_v38 = vld [vmem:[%s3535_s0 + $0x160] sm:$0xff]  ;;  %v421_v40 = vld [vmem:[%s3535_s0 + $0x158] sm:$0xff]  ;;  %v420_v42 = vld [vmem:[%s3535_s0 + $0x150] sm:$0xff] }
  0x2e   : > { %828 = vmatpush2.msra.mxu1 %v504_v3  ;;  %668 = vmatprep.subr.mxu0 %v439_v4  ;;  %v486_v39 = vld [vmem:[%s3535_s0 + $0x360] sm:$0xff]  ;;  %v485_v41 = vld [vmem:[%s3535_s0 + $0x358] sm:$0xff]  ;;  %v484_v43 = vld [vmem:[%s3535_s0 + $0x350] sm:$0xff] }
  0x2f   : > { %829 = vmatprep.subr.mxu1 %v503_v5  ;;  %669 = vmatpush2.msra.mxu0 %v438_v6  ;;  %v419_v44 = vld [vmem:[%s3535_s0 + $0x148] sm:$0xff]  ;;  %v418_v46 = vld [vmem:[%s3535_s0 + $0x140] sm:$0xff]  ;;  %v417_v48 = vld [vmem:[%s3535_s0 + $0x138] sm:$0xff] }
  0x30   : > { %830 = vmatpush2.msra.mxu1 %v502_v7  ;;  %670 = vmatprep.subr.mxu0 %v437_v8  ;;  %v483_v45 = vld [vmem:[%s3535_s0 + $0x348] sm:$0xff]  ;;  %v482_v47 = vld [vmem:[%s3535_s0 + $0x340] sm:$0xff]  ;;  %v481_v49 = vld [vmem:[%s3535_s0 + $0x338] sm:$0xff] }
  0x31   : > { %831 = vmatprep.subr.mxu1 %v501_v9  ;;  %671 = vmatpush2.msra.mxu0 %v436_v10  ;;  %v416_v50 = vld [vmem:[%s3535_s0 + $0x130] sm:$0xff]  ;;  %v415_v52 = vld [vmem:[%s3535_s0 + $0x128] sm:$0xff]  ;;  %v414_v54 = vld [vmem:[%s3535_s0 + $0x120] sm:$0xff] }
  0x32   : > { %832 = vmatpush2.msra.mxu1 %v500_v11  ;;  %672 = vmatprep.subr.mxu0 %v435_v12  ;;  %v480_v51 = vld [vmem:[%s3535_s0 + $0x330] sm:$0xff]  ;;  %v479_v53 = vld [vmem:[%s3535_s0 + $0x328] sm:$0xff]  ;;  %v478_v55 = vld [vmem:[%s3535_s0 + $0x320] sm:$0xff] }
  0x33   : > { %833 = vmatprep.subr.mxu1 %v499_v13  ;;  %673 = vmatpush2.msra.mxu0 %v434_v14  ;;  %v413_v56 = vld [vmem:[%s3535_s0 + $0x118] sm:$0xff]  ;;  %v412_v58 = vld [vmem:[%s3535_s0 + $0x110] sm:$0xff]  ;;  %v411_v60 = vld [vmem:[%s3535_s0 + $0x108] sm:$0xff] }
  0x34   : > { %834 = vmatpush2.msra.mxu1 %v498_v15  ;;  %674 = vmatprep.subr.mxu0 %v433_v16  ;;  %v477_v57 = vld [vmem:[%s3535_s0 + $0x318] sm:$0xff]  ;;  %v476_v59 = vld [vmem:[%s3535_s0 + $0x310] sm:$0xff]  ;;  %v475_v61 = vld [vmem:[%s3535_s0 + $0x308] sm:$0xff] }
  0x35   : > { %835 = vmatprep.subr.mxu1 %v497_v17  ;;  %675 = vmatpush2.msra.mxu0 %v432_v18  ;;  %v410_v62 = vld [vmem:[%s3535_s0 + $0x100] sm:$0xff]  ;;  %v251_v63 = vld [vmem:[%s2437_s24 + $0x8] sm:$0xff]  ;;  %v253_v1 = vld [vmem:[%s2437_s24 + $0x18] sm:$0xff] }
  0x36   : > { %836 = vmatpush2.msra.mxu1 %v496_v19  ;;  %676 = vmatprep.subr.mxu0 %v431_v20  ;;  %v474_v0 = vld [vmem:[%s3535_s0 + $0x300] sm:$0xff]  ;;  %v252_v3 = vld [vmem:[%s2437_s24 + $0x10] sm:$0xff]  ;;  %v537_v4 = vld [vmem:[%s3535_s0 + $0x4f8] sm:$0xff] }
  0x37   : > { %837 = vmatprep.subr.mxu1 %v495_v21  ;;  %677 = vmatpush2.msra.mxu0 %v430_v22  ;;  %v250_v2 = vld [vmem:[%s2437_s24] sm:$0xff]  ;;  %v601_v5 = vld [vmem:[%s3535_s0 + $0x6f8] sm:$0xff]  ;;  %v536_v6 = vld [vmem:[%s3535_s0 + $0x4f0] sm:$0xff] }
  0x38   : > { %838 = vmatpush2.msra.mxu1 %v494_v23  ;;  %678 = vmatprep.subr.mxu0 %v429_v24  ;;  %v600_v7 = vld [vmem:[%s3535_s0 + $0x6f0] sm:$0xff]  ;;  %v535_v8 = vld [vmem:[%s3535_s0 + $0x4e8] sm:$0xff]  ;;  %v261_v10 = vld [vmem:[%s2437_s24 + $0x58] sm:$0xff] }
  0x39   : > { %839 = vmatprep.subr.mxu1 %v493_v25  ;;  %679 = vmatpush2.msra.mxu0 %v428_v26  ;;  %v259_v9 = vld [vmem:[%s2437_s24 + $0x48] sm:$0xff]  ;;  %v534_v11 = vld [vmem:[%s3535_s0 + $0x4e0] sm:$0xff]  ;;  %v260_v14 = vld [vmem:[%s2437_s24 + $0x50] sm:$0xff] }
  0x3a   : > { %840 = vmatpush2.msra.mxu1 %v492_v27  ;;  %680 = vmatprep.subr.mxu0 %v427_v28  ;;  %v599_v12 = vld [vmem:[%s3535_s0 + $0x6e8] sm:$0xff]  ;;  %v258_v13 = vld [vmem:[%s2437_s24 + $0x40] sm:$0xff]  ;;  %v533_v15 = vld [vmem:[%s3535_s0 + $0x4d8] sm:$0xff] }
  0x3b   : > { %841 = vmatprep.subr.mxu1 %v491_v29  ;;  %681 = vmatpush2.msra.mxu0 %v426_v30  ;;  %v598_v16 = vld [vmem:[%s3535_s0 + $0x6e0] sm:$0xff]  ;;  %v532_v17 = vld [vmem:[%s3535_s0 + $0x4d0] sm:$0xff]  ;;  %v597_v18 = vld [vmem:[%s3535_s0 + $0x6d8] sm:$0xff] }
  0x3c   : > { %842 = vmatpush2.msra.mxu1 %v490_v31  ;;  %682 = vmatprep.subr.mxu0 %v425_v32  ;;  %v531_v19 = vld [vmem:[%s3535_s0 + $0x4c8] sm:$0xff]  ;;  %v596_v20 = vld [vmem:[%s3535_s0 + $0x6d0] sm:$0xff]  ;;  %v269_v22 = vld [vmem:[%s2437_s24 + $0x98] sm:$0xff] }
  0x3d   : > { %843 = vmatprep.subr.mxu1 %v489_v33  ;;  %683 = vmatpush2.msra.mxu0 %v424_v34  ;;  %v267_v21 = vld [vmem:[%s2437_s24 + $0x88] sm:$0xff]  ;;  %v530_v23 = vld [vmem:[%s3535_s0 + $0x4c0] sm:$0xff]  ;;  %v268_v26 = vld [vmem:[%s2437_s24 + $0x90] sm:$0xff] }
  0x3e   : > { %844 = vmatpush2.msra.mxu1 %v488_v35  ;;  %684 = vmatprep.subr.mxu0 %v423_v36  ;;  %v595_v24 = vld [vmem:[%s3535_s0 + $0x6c8] sm:$0xff]  ;;  %v266_v25 = vld [vmem:[%s2437_s24 + $0x80] sm:$0xff]  ;;  %v529_v27 = vld [vmem:[%s3535_s0 + $0x4b8] sm:$0xff] }
  0x3f   : > { %845 = vmatprep.subr.mxu1 %v487_v37  ;;  %685 = vmatpush2.msra.mxu0 %v422_v38  ;;  %v594_v28 = vld [vmem:[%s3535_s0 + $0x6c0] sm:$0xff]  ;;  %v528_v29 = vld [vmem:[%s3535_s0 + $0x4b0] sm:$0xff]  ;;  %v593_v30 = vld [vmem:[%s3535_s0 + $0x6b8] sm:$0xff] }
  0x40   : > { %846 = vmatpush2.msra.mxu1 %v486_v39  ;;  %686 = vmatprep.subr.mxu0 %v421_v40  ;;  %v527_v31 = vld [vmem:[%s3535_s0 + $0x4a8] sm:$0xff]  ;;  %v592_v32 = vld [vmem:[%s3535_s0 + $0x6b0] sm:$0xff]  ;;  %v277_v34 = vld [vmem:[%s2437_s24 + $0xd8] sm:$0xff] }
  0x41   : > { %847 = vmatprep.subr.mxu1 %v485_v41  ;;  %687 = vmatpush2.msra.mxu0 %v420_v42  ;;  %v275_v33 = vld [vmem:[%s2437_s24 + $0xc8] sm:$0xff]  ;;  %v526_v35 = vld [vmem:[%s3535_s0 + $0x4a0] sm:$0xff]  ;;  %v276_v38 = vld [vmem:[%s2437_s24 + $0xd0] sm:$0xff] }
  0x42   : > { %848 = vmatpush2.msra.mxu1 %v484_v43  ;;  %688 = vmatprep.subr.mxu0 %v419_v44  ;;  %v591_v36 = vld [vmem:[%s3535_s0 + $0x6a8] sm:$0xff]  ;;  %v274_v37 = vld [vmem:[%s2437_s24 + $0xc0] sm:$0xff]  ;;  %v525_v39 = vld [vmem:[%s3535_s0 + $0x498] sm:$0xff] }
  0x43   : > { %849 = vmatprep.subr.mxu1 %v483_v45  ;;  %689 = vmatpush2.msra.mxu0 %v418_v46  ;;  %v590_v40 = vld [vmem:[%s3535_s0 + $0x6a0] sm:$0xff]  ;;  %v524_v41 = vld [vmem:[%s3535_s0 + $0x490] sm:$0xff]  ;;  %v589_v42 = vld [vmem:[%s3535_s0 + $0x698] sm:$0xff] }
  0x44   : > { %850 = vmatpush2.msra.mxu1 %v482_v47  ;;  %690 = vmatprep.subr.mxu0 %v417_v48  ;;  %v523_v43 = vld [vmem:[%s3535_s0 + $0x488] sm:$0xff]  ;;  %v588_v44 = vld [vmem:[%s3535_s0 + $0x690] sm:$0xff]  ;;  %v285_v46 = vld [vmem:[%s2437_s24 + $0x118] sm:$0xff] }
  0x45   : > { %851 = vmatprep.subr.mxu1 %v481_v49  ;;  %691 = vmatpush2.msra.mxu0 %v416_v50  ;;  %v283_v45 = vld [vmem:[%s2437_s24 + $0x108] sm:$0xff]  ;;  %v522_v47 = vld [vmem:[%s3535_s0 + $0x480] sm:$0xff]  ;;  %v284_v50 = vld [vmem:[%s2437_s24 + $0x110] sm:$0xff] }
  0x46   : > { %852 = vmatpush2.msra.mxu1 %v480_v51  ;;  %692 = vmatprep.subr.mxu0 %v415_v52  ;;  %v587_v48 = vld [vmem:[%s3535_s0 + $0x688] sm:$0xff]  ;;  %v282_v49 = vld [vmem:[%s2437_s24 + $0x100] sm:$0xff]  ;;  %v521_v51 = vld [vmem:[%s3535_s0 + $0x478] sm:$0xff] }
  0x47   : > { %853 = vmatprep.subr.mxu1 %v479_v53  ;;  %693 = vmatpush2.msra.mxu0 %v414_v54  ;;  %v586_v52 = vld [vmem:[%s3535_s0 + $0x680] sm:$0xff]  ;;  %v520_v53 = vld [vmem:[%s3535_s0 + $0x470] sm:$0xff]  ;;  %v585_v54 = vld [vmem:[%s3535_s0 + $0x678] sm:$0xff] }
  0x48   : > { %854 = vmatpush2.msra.mxu1 %v478_v55  ;;  %694 = vmatprep.subr.mxu0 %v413_v56  ;;  %v519_v55 = vld [vmem:[%s3535_s0 + $0x468] sm:$0xff]  ;;  %v584_v56 = vld [vmem:[%s3535_s0 + $0x670] sm:$0xff] }
  0x49   : > { %855 = vmatprep.subr.mxu1 %v477_v57  ;;  %695 = vmatpush2.msra.mxu0 %v412_v58  ;;  %v291_v57 = vld [vmem:[%s2437_s24 + $0x148] sm:$0xff]  ;;  %v293_v58 = vld [vmem:[%s2437_s24 + $0x158] sm:$0xff] }
  0x4a   : > { %856 = vmatpush2.msra.mxu1 %v476_v59  ;;  %696 = vmatprep.subr.mxu0 %v411_v60  ;;  %v518_v59 = vld [vmem:[%s3535_s0 + $0x460] sm:$0xff]  ;;  %v583_v60 = vld [vmem:[%s3535_s0 + $0x668] sm:$0xff] }
  0x4b   : > { %857 = vmatprep.subr.mxu1 %v475_v61  ;;  %697 = vmatpush2.msra.mxu0 %v410_v62  ;;  %v290_v61 = vld [vmem:[%s2437_s24 + $0x140] sm:$0xff]  ;;  %v292_v62 = vld [vmem:[%s2437_s24 + $0x150] sm:$0xff] }
  0x4c   : > { %698 = vmatprep.mubr.f32.mxu0 %v251_v63  ;;  %858 = vmatpush2.msra.mxu1 %v474_v0  ;;  %v517_v63 = vld [vmem:[%s3535_s0 + $0x458] sm:$0xff]  ;;  %v582_v0 = vld [vmem:[%s3535_s0 + $0x660] sm:$0xff] }
  0x4d   : > { %859 = vmatprep.mubr.f32.mxu1 %v253_v1  ;;  %699 = vmatmul.mubr.f32.vlgmr.msra.gmra.mxu0 %v250_v2  ;;  %v516_v1 = vld [vmem:[%s3535_s0 + $0x450] sm:$0xff]  ;;  %v581_v2 = vld [vmem:[%s3535_s0 + $0x658] sm:$0xff] }
  0x4e   : > { %860 = vmatmul.mubr.f32.vlgmr.msra.gmra.mxu1 %v252_v3  ;;  %956 = vmatprep.subr.mxu0 %v537_v4  ;;  %v515_v3 = vld [vmem:[%s3535_s0 + $0x448] sm:$0xff]  ;;  %v580_v4 = vld [vmem:[%s3535_s0 + $0x650] sm:$0xff] }
  0x4f   : > { %1117 = vmatprep.subr.mxu1 %v601_v5  ;;  %957 = vmatpush1.msra.mxu0 %v536_v6  ;;  %v299_v5 = vld [vmem:[%s2437_s24 + $0x188] sm:$0xff]  ;;  %v301_v6 = vld [vmem:[%s2437_s24 + $0x198] sm:$0xff] }
  0x50   : > { %1118 = vmatpush1.msra.mxu1 %v600_v7  ;;  %958 = vmatprep.subr.mxu0 %v535_v8  ;;  %v514_v7 = vld [vmem:[%s3535_s0 + $0x440] sm:$0xff]  ;;  %v579_v8 = vld [vmem:[%s3535_s0 + $0x648] sm:$0xff] }
  0x51   : > { %704 = vmatprep.mubr.f32.mxu0 %v259_v9  ;;  %865 = vmatprep.mubr.f32.mxu1 %v261_v10  ;;  %v298_v9 = vld [vmem:[%s2437_s24 + $0x180] sm:$0xff]  ;;  %v300_v10 = vld [vmem:[%s2437_s24 + $0x190] sm:$0xff] }
  0x52   : > { %959 = vmatpush1.msra.mxu0 %v534_v11  ;;  %1119 = vmatprep.subr.mxu1 %v599_v12  ;;  %v513_v11 = vld [vmem:[%s3535_s0 + $0x438] sm:$0xff]  ;;  %v578_v12 = vld [vmem:[%s3535_s0 + $0x640] sm:$0xff] }
  0x53   : > { %705 = vmatmul.mubr.f32.gmra.mxu0 %v258_v13  ;;  %866 = vmatmul.mubr.f32.gmra.mxu1 %v260_v14  ;;  %v512_v13 = vld [vmem:[%s3535_s0 + $0x430] sm:$0xff]  ;;  %v577_v14 = vld [vmem:[%s3535_s0 + $0x638] sm:$0xff] }
  0x54   : > { %960 = vmatprep.subr.mxu0 %v533_v15  ;;  %1120 = vmatpush1.msra.mxu1 %v598_v16  ;;  %v511_v15 = vld [vmem:[%s3535_s0 + $0x428] sm:$0xff]  ;;  %v576_v16 = vld [vmem:[%s3535_s0 + $0x630] sm:$0xff] }
  0x55   : > { %961 = vmatpush1.msra.mxu0 %v532_v17  ;;  %1121 = vmatprep.subr.mxu1 %v597_v18  ;;  %v307_v17 = vld [vmem:[%s2437_s24 + $0x1c8] sm:$0xff]  ;;  %v309_v18 = vld [vmem:[%s2437_s24 + $0x1d8] sm:$0xff] }
  0x56   : > { %962 = vmatprep.subr.mxu0 %v531_v19  ;;  %1122 = vmatpush1.msra.mxu1 %v596_v20  ;;  %v510_v19 = vld [vmem:[%s3535_s0 + $0x420] sm:$0xff]  ;;  %v575_v20 = vld [vmem:[%s3535_s0 + $0x628] sm:$0xff] }
  0x57   : > { %710 = vmatprep.mubr.f32.mxu0 %v267_v21  ;;  %871 = vmatprep.mubr.f32.mxu1 %v269_v22  ;;  %v306_v21 = vld [vmem:[%s2437_s24 + $0x1c0] sm:$0xff]  ;;  %v308_v22 = vld [vmem:[%s2437_s24 + $0x1d0] sm:$0xff] }
  0x58   : > { %963 = vmatpush1.msra.mxu0 %v530_v23  ;;  %1123 = vmatprep.subr.mxu1 %v595_v24  ;;  %v509_v23 = vld [vmem:[%s3535_s0 + $0x418] sm:$0xff]  ;;  %v574_v24 = vld [vmem:[%s3535_s0 + $0x620] sm:$0xff] }
  0x59   : > { %711 = vmatmul.mubr.f32.gmra.mxu0 %v266_v25  ;;  %872 = vmatmul.mubr.f32.gmra.mxu1 %v268_v26  ;;  %v508_v25 = vld [vmem:[%s3535_s0 + $0x410] sm:$0xff]  ;;  %v573_v26 = vld [vmem:[%s3535_s0 + $0x618] sm:$0xff] }
  0x5a   : > { %964 = vmatprep.subr.mxu0 %v529_v27  ;;  %1124 = vmatpush1.msra.mxu1 %v594_v28  ;;  %v507_v27 = vld [vmem:[%s3535_s0 + $0x408] sm:$0xff]  ;;  %v572_v28 = vld [vmem:[%s3535_s0 + $0x610] sm:$0xff] }
  0x5b   : > { %965 = vmatpush1.msra.mxu0 %v528_v29  ;;  %1125 = vmatprep.subr.mxu1 %v593_v30  ;;  %v315_v29 = vld [vmem:[%s2437_s24 + $0x208] sm:$0xff]  ;;  %v317_v30 = vld [vmem:[%s2437_s24 + $0x218] sm:$0xff] }
  0x5c   : > { %966 = vmatprep.subr.mxu0 %v527_v31  ;;  %1126 = vmatpush1.msra.mxu1 %v592_v32  ;;  %v506_v31 = vld [vmem:[%s3535_s0 + $0x400] sm:$0xff]  ;;  %v571_v32 = vld [vmem:[%s3535_s0 + $0x608] sm:$0xff] }
  0x5d   : > { %716 = vmatprep.mubr.f32.mxu0 %v275_v33  ;;  %877 = vmatprep.mubr.f32.mxu1 %v277_v34  ;;  %v314_v33 = vld [vmem:[%s2437_s24 + $0x200] sm:$0xff]  ;;  %v316_v34 = vld [vmem:[%s2437_s24 + $0x210] sm:$0xff] }
  0x5e   : > { %967 = vmatpush1.msra.mxu0 %v526_v35  ;;  %1127 = vmatprep.subr.mxu1 %v591_v36  ;;  %v569_v35 = vld [vmem:[%s3535_s0 + $0x5f8] sm:$0xff]  ;;  %v570_v36 = vld [vmem:[%s3535_s0 + $0x600] sm:$0xff] }
  0x5f   : > { %717 = vmatmul.mubr.f32.gmra.mxu0 %v274_v37  ;;  %878 = vmatmul.mubr.f32.gmra.mxu1 %v276_v38  ;;  %v568_v37 = vld [vmem:[%s3535_s0 + $0x5f0] sm:$0xff]  ;;  %v633_v38 = vld [vmem:[%s3535_s0 + $0x7f8] sm:$0xff] }
  0x60   : > { %968 = vmatprep.subr.mxu0 %v525_v39  ;;  %1128 = vmatpush1.msra.mxu1 %v590_v40  ;;  %v567_v39 = vld [vmem:[%s3535_s0 + $0x5e8] sm:$0xff]  ;;  %v632_v40 = vld [vmem:[%s3535_s0 + $0x7f0] sm:$0xff] }
  0x61   : > { %969 = vmatpush1.msra.mxu0 %v524_v41  ;;  %1129 = vmatprep.subr.mxu1 %v589_v42  ;;  %v323_v41 = vld [vmem:[%s2437_s24 + $0x248] sm:$0xff]  ;;  %v325_v42 = vld [vmem:[%s2437_s24 + $0x258] sm:$0xff] }
  0x62   : > { %970 = vmatprep.subr.mxu0 %v523_v43  ;;  %1130 = vmatpush1.msra.mxu1 %v588_v44  ;;  %v566_v43 = vld [vmem:[%s3535_s0 + $0x5e0] sm:$0xff]  ;;  %v631_v44 = vld [vmem:[%s3535_s0 + $0x7e8] sm:$0xff] }
  0x63   : > { %722 = vmatprep.mubr.f32.mxu0 %v283_v45  ;;  %883 = vmatprep.mubr.f32.mxu1 %v285_v46  ;;  %v322_v45 = vld [vmem:[%s2437_s24 + $0x240] sm:$0xff]  ;;  %v324_v46 = vld [vmem:[%s2437_s24 + $0x250] sm:$0xff] }
  0x64   : > { %971 = vmatpush1.msra.mxu0 %v522_v47  ;;  %1131 = vmatprep.subr.mxu1 %v587_v48  ;;  %v565_v47 = vld [vmem:[%s3535_s0 + $0x5d8] sm:$0xff]  ;;  %v630_v48 = vld [vmem:[%s3535_s0 + $0x7e0] sm:$0xff] }
  0x65   : > { %723 = vmatmul.mubr.f32.gmra.mxu0 %v282_v49  ;;  %884 = vmatmul.mubr.f32.gmra.mxu1 %v284_v50  ;;  %v564_v49 = vld [vmem:[%s3535_s0 + $0x5d0] sm:$0xff]  ;;  %v629_v50 = vld [vmem:[%s3535_s0 + $0x7d8] sm:$0xff] }
  0x66   : > { %972 = vmatprep.subr.mxu0 %v521_v51  ;;  %1132 = vmatpush1.msra.mxu1 %v586_v52  ;;  %v563_v51 = vld [vmem:[%s3535_s0 + $0x5c8] sm:$0xff]  ;;  %v628_v52 = vld [vmem:[%s3535_s0 + $0x7d0] sm:$0xff] }
  0x67   : > { %973 = vmatpush1.msra.mxu0 %v520_v53  ;;  %1133 = vmatprep.subr.mxu1 %v585_v54  ;;  %v331_v53 = vld [vmem:[%s2437_s24 + $0x288] sm:$0xff]  ;;  %v333_v54 = vld [vmem:[%s2437_s24 + $0x298] sm:$0xff] }
  0x68   : > { %974 = vmatprep.subr.mxu0 %v519_v55  ;;  %1134 = vmatpush1.msra.mxu1 %v584_v56  ;;  %v562_v55 = vld [vmem:[%s3535_s0 + $0x5c0] sm:$0xff]  ;;  %v627_v56 = vld [vmem:[%s3535_s0 + $0x7c8] sm:$0xff] }
  0x69   : > { %728 = vmatprep.mubr.f32.mxu0 %v291_v57  ;;  %889 = vmatprep.mubr.f32.mxu1 %v293_v58  ;;  %v330_v57 = vld [vmem:[%s2437_s24 + $0x280] sm:$0xff]  ;;  %v332_v58 = vld [vmem:[%s2437_s24 + $0x290] sm:$0xff] }
  0x6a   : > { %975 = vmatpush1.msra.mxu0 %v518_v59  ;;  %1135 = vmatprep.subr.mxu1 %v583_v60  ;;  %v561_v59 = vld [vmem:[%s3535_s0 + $0x5b8] sm:$0xff]  ;;  %v626_v60 = vld [vmem:[%s3535_s0 + $0x7c0] sm:$0xff] }
  0x6b   : > { %729 = vmatmul.mubr.f32.gmra.mxu0 %v290_v61  ;;  %890 = vmatmul.mubr.f32.gmra.mxu1 %v292_v62  ;;  %v560_v61 = vld [vmem:[%s3535_s0 + $0x5b0] sm:$0xff]  ;;  %v625_v62 = vld [vmem:[%s3535_s0 + $0x7b8] sm:$0xff] }
  0x6c   : > { %976 = vmatprep.subr.mxu0 %v517_v63  ;;  %1136 = vmatpush1.msra.mxu1 %v582_v0  ;;  %v559_v63 = vld [vmem:[%s3535_s0 + $0x5a8] sm:$0xff]  ;;  %v624_v0 = vld [vmem:[%s3535_s0 + $0x7b0] sm:$0xff] }
  0x6d   : > { %977 = vmatpush1.msra.mxu0 %v516_v1  ;;  %1137 = vmatprep.subr.mxu1 %v581_v2  ;;  %v339_v1 = vld [vmem:[%s2437_s24 + $0x2c8] sm:$0xff]  ;;  %v341_v2 = vld [vmem:[%s2437_s24 + $0x2d8] sm:$0xff] }
  0x6e   : > { %978 = vmatprep.subr.mxu0 %v515_v3  ;;  %1138 = vmatpush1.msra.mxu1 %v580_v4  ;;  %v558_v3 = vld [vmem:[%s3535_s0 + $0x5a0] sm:$0xff]  ;;  %v623_v4 = vld [vmem:[%s3535_s0 + $0x7a8] sm:$0xff] }
  0x6f   : > { %734 = vmatprep.mubr.f32.mxu0 %v299_v5  ;;  %895 = vmatprep.mubr.f32.mxu1 %v301_v6  ;;  %v338_v5 = vld [vmem:[%s2437_s24 + $0x2c0] sm:$0xff]  ;;  %v340_v6 = vld [vmem:[%s2437_s24 + $0x2d0] sm:$0xff] }
  0x70   : > { %979 = vmatpush1.msra.mxu0 %v514_v7  ;;  %1139 = vmatprep.subr.mxu1 %v579_v8  ;;  %v557_v7 = vld [vmem:[%s3535_s0 + $0x598] sm:$0xff]  ;;  %v622_v8 = vld [vmem:[%s3535_s0 + $0x7a0] sm:$0xff] }
  0x71   : > { %735 = vmatmul.mubr.f32.gmra.mxu0 %v298_v9  ;;  %896 = vmatmul.mubr.f32.gmra.mxu1 %v300_v10  ;;  %v556_v9 = vld [vmem:[%s3535_s0 + $0x590] sm:$0xff]  ;;  %v621_v10 = vld [vmem:[%s3535_s0 + $0x798] sm:$0xff] }
  0x72   : > { %980 = vmatprep.subr.mxu0 %v513_v11  ;;  %1140 = vmatpush1.msra.mxu1 %v578_v12  ;;  %v555_v11 = vld [vmem:[%s3535_s0 + $0x588] sm:$0xff]  ;;  %v620_v12 = vld [vmem:[%s3535_s0 + $0x790] sm:$0xff] }
  0x73   : > { %981 = vmatpush1.msra.mxu0 %v512_v13  ;;  %1141 = vmatprep.subr.mxu1 %v577_v14  ;;  %v347_v13 = vld [vmem:[%s2437_s24 + $0x308] sm:$0xff]  ;;  %v349_v14 = vld [vmem:[%s2437_s24 + $0x318] sm:$0xff] }
  0x74   : > { %982 = vmatprep.subr.mxu0 %v511_v15  ;;  %1142 = vmatpush1.msra.mxu1 %v576_v16  ;;  %v554_v15 = vld [vmem:[%s3535_s0 + $0x580] sm:$0xff]  ;;  %v619_v16 = vld [vmem:[%s3535_s0 + $0x788] sm:$0xff] }
  0x75   : > { %740 = vmatprep.mubr.f32.mxu0 %v307_v17  ;;  %901 = vmatprep.mubr.f32.mxu1 %v309_v18  ;;  %v346_v17 = vld [vmem:[%s2437_s24 + $0x300] sm:$0xff]  ;;  %v348_v18 = vld [vmem:[%s2437_s24 + $0x310] sm:$0xff] }
  0x76   : > { %983 = vmatpush1.msra.mxu0 %v510_v19  ;;  %1143 = vmatprep.subr.mxu1 %v575_v20  ;;  %v553_v19 = vld [vmem:[%s3535_s0 + $0x578] sm:$0xff]  ;;  %v618_v20 = vld [vmem:[%s3535_s0 + $0x780] sm:$0xff] }
  0x77   : > { %741 = vmatmul.mubr.f32.gmra.mxu0 %v306_v21  ;;  %902 = vmatmul.mubr.f32.gmra.mxu1 %v308_v22  ;;  %v552_v21 = vld [vmem:[%s3535_s0 + $0x570] sm:$0xff]  ;;  %v617_v22 = vld [vmem:[%s3535_s0 + $0x778] sm:$0xff] }
  0x78   : > { %984 = vmatprep.subr.mxu0 %v509_v23  ;;  %1144 = vmatpush1.msra.mxu1 %v574_v24  ;;  %v551_v23 = vld [vmem:[%s3535_s0 + $0x568] sm:$0xff]  ;;  %v616_v24 = vld [vmem:[%s3535_s0 + $0x770] sm:$0xff] }
  0x79   : > { %985 = vmatpush1.msra.mxu0 %v508_v25  ;;  %1145 = vmatprep.subr.mxu1 %v573_v26  ;;  %v355_v25 = vld [vmem:[%s2437_s24 + $0x348] sm:$0xff]  ;;  %v357_v26 = vld [vmem:[%s2437_s24 + $0x358] sm:$0xff] }
  0x7a   : > { %986 = vmatprep.subr.mxu0 %v507_v27  ;;  %1146 = vmatpush1.msra.mxu1 %v572_v28  ;;  %v550_v27 = vld [vmem:[%s3535_s0 + $0x560] sm:$0xff]  ;;  %v615_v28 = vld [vmem:[%s3535_s0 + $0x768] sm:$0xff] }
  0x7b   : > { %746 = vmatprep.mubr.f32.mxu0 %v315_v29  ;;  %907 = vmatprep.mubr.f32.mxu1 %v317_v30  ;;  %v354_v29 = vld [vmem:[%s2437_s24 + $0x340] sm:$0xff]  ;;  %v356_v30 = vld [vmem:[%s2437_s24 + $0x350] sm:$0xff] }
  0x7c   : > { %987 = vmatpush1.msra.mxu0 %v506_v31  ;;  %1147 = vmatprep.subr.mxu1 %v571_v32  ;;  %v549_v31 = vld [vmem:[%s3535_s0 + $0x558] sm:$0xff]  ;;  %v614_v32 = vld [vmem:[%s3535_s0 + $0x760] sm:$0xff] }
  0x7d   : > { %747 = vmatmul.mubr.f32.gmra.mxu0 %v314_v33  ;;  %908 = vmatmul.mubr.f32.gmra.mxu1 %v316_v34  ;;  %v548_v33 = vld [vmem:[%s3535_s0 + $0x550] sm:$0xff]  ;;  %v613_v34 = vld [vmem:[%s3535_s0 + $0x758] sm:$0xff] }
  0x7e   : > { %988 = vmatprep.subr.mxu0 %v569_v35  ;;  %1148 = vmatpush1.msra.mxu1 %v570_v36  ;;  %v547_v35 = vld [vmem:[%s3535_s0 + $0x548] sm:$0xff]  ;;  %v612_v36 = vld [vmem:[%s3535_s0 + $0x750] sm:$0xff] }
  0x7f   : > { %989 = vmatpush2.msra.mxu0 %v568_v37  ;;  %1149 = vmatprep.subr.mxu1 %v633_v38  ;;  %v363_v37 = vld [vmem:[%s2437_s24 + $0x388] sm:$0xff]  ;;  %v365_v38 = vld [vmem:[%s2437_s24 + $0x398] sm:$0xff] }
  0x80   : > { %990 = vmatprep.subr.mxu0 %v567_v39  ;;  %1150 = vmatpush2.msra.mxu1 %v632_v40  ;;  %v546_v39 = vld [vmem:[%s3535_s0 + $0x540] sm:$0xff]  ;;  %v611_v40 = vld [vmem:[%s3535_s0 + $0x748] sm:$0xff] }
  0x81   : > { %752 = vmatprep.mubr.f32.mxu0 %v323_v41  ;;  %913 = vmatprep.mubr.f32.mxu1 %v325_v42  ;;  %v362_v41 = vld [vmem:[%s2437_s24 + $0x380] sm:$0xff]  ;;  %v364_v42 = vld [vmem:[%s2437_s24 + $0x390] sm:$0xff] }
  0x82   : > { %991 = vmatpush2.msra.mxu0 %v566_v43  ;;  %1151 = vmatprep.subr.mxu1 %v631_v44  ;;  %v545_v43 = vld [vmem:[%s3535_s0 + $0x538] sm:$0xff]  ;;  %v610_v44 = vld [vmem:[%s3535_s0 + $0x740] sm:$0xff] }
  0x83   : > { %753 = vmatmul.mubr.f32.gmra.mxu0 %v322_v45  ;;  %914 = vmatmul.mubr.f32.gmra.mxu1 %v324_v46  ;;  %v544_v45 = vld [vmem:[%s3535_s0 + $0x530] sm:$0xff]  ;;  %v609_v46 = vld [vmem:[%s3535_s0 + $0x738] sm:$0xff] }
  0x84   : > { %992 = vmatprep.subr.mxu0 %v565_v47  ;;  %1152 = vmatpush2.msra.mxu1 %v630_v48  ;;  %v543_v47 = vld [vmem:[%s3535_s0 + $0x528] sm:$0xff]  ;;  %v608_v48 = vld [vmem:[%s3535_s0 + $0x730] sm:$0xff] }
  0x85   : > { %993 = vmatpush2.msra.mxu0 %v564_v49  ;;  %1153 = vmatprep.subr.mxu1 %v629_v50  ;;  %v371_v49 = vld [vmem:[%s2437_s24 + $0x3c8] sm:$0xff]  ;;  %v373_v50 = vld [vmem:[%s2437_s24 + $0x3d8] sm:$0xff] }
  0x86   : > { %994 = vmatprep.subr.mxu0 %v563_v51  ;;  %1154 = vmatpush2.msra.mxu1 %v628_v52  ;;  %v542_v51 = vld [vmem:[%s3535_s0 + $0x520] sm:$0xff]  ;;  %v607_v52 = vld [vmem:[%s3535_s0 + $0x728] sm:$0xff] }
  0x87   : > { %758 = vmatprep.mubr.f32.mxu0 %v331_v53  ;;  %919 = vmatprep.mubr.f32.mxu1 %v333_v54  ;;  %v370_v53 = vld [vmem:[%s2437_s24 + $0x3c0] sm:$0xff]  ;;  %v372_v54 = vld [vmem:[%s2437_s24 + $0x3d0] sm:$0xff] }
  0x88   : > { %995 = vmatpush2.msra.mxu0 %v562_v55  ;;  %1155 = vmatprep.subr.mxu1 %v627_v56  ;;  %v541_v55 = vld [vmem:[%s3535_s0 + $0x518] sm:$0xff]  ;;  %v606_v56 = vld [vmem:[%s3535_s0 + $0x720] sm:$0xff] }
  0x89   : > { %759 = vmatmul.mubr.f32.gmra.mxu0 %v330_v57  ;;  %920 = vmatmul.mubr.f32.gmra.mxu1 %v332_v58  ;;  %v540_v57 = vld [vmem:[%s3535_s0 + $0x510] sm:$0xff]  ;;  %v605_v58 = vld [vmem:[%s3535_s0 + $0x718] sm:$0xff] }
  0x8a   : > { %996 = vmatprep.subr.mxu0 %v561_v59  ;;  %1156 = vmatpush2.msra.mxu1 %v626_v60  ;;  %v539_v59 = vld [vmem:[%s3535_s0 + $0x508] sm:$0xff]  ;;  %v604_v60 = vld [vmem:[%s3535_s0 + $0x710] sm:$0xff] }
  0x8b   : > { %997 = vmatpush2.msra.mxu0 %v560_v61  ;;  %1157 = vmatprep.subr.mxu1 %v625_v62  ;;  %v538_v61 = vld [vmem:[%s3535_s0 + $0x500] sm:$0xff]  ;;  %v255_v62 = vld [vmem:[%s2437_s24 + $0x28] sm:$0xff] }
  0x8c   : > { %998 = vmatprep.subr.mxu0 %v559_v63  ;;  %1158 = vmatpush2.msra.mxu1 %v624_v0  ;;  %v603_v63 = vld [vmem:[%s3535_s0 + $0x708] sm:$0xff]  ;;  %v254_v0 = vld [vmem:[%s2437_s24 + $0x20] sm:$0xff] }
  0x8d   : > { %764 = vmatprep.mubr.f32.mxu0 %v339_v1  ;;  %925 = vmatprep.mubr.f32.mxu1 %v341_v2  ;;  %v602_v1 = vld [vmem:[%s3535_s0 + $0x700] sm:$0xff]  ;;  %v257_v2 = vld [vmem:[%s2437_s24 + $0x38] sm:$0xff] }
  0x8e   : > { %999 = vmatpush2.msra.mxu0 %v558_v3  ;;  %1159 = vmatprep.subr.mxu1 %v623_v4  ;;  %v263_v3 = vld [vmem:[%s2437_s24 + $0x68] sm:$0xff]  ;;  %v256_v4 = vld [vmem:[%s2437_s24 + $0x30] sm:$0xff] }
  0x8f   : > { %765 = vmatmul.mubr.f32.gmra.mxu0 %v338_v5  ;;  %926 = vmatmul.mubr.f32.gmra.mxu1 %v340_v6  ;;  %v265_v5 = vld [vmem:[%s2437_s24 + $0x78] sm:$0xff]  ;;  %v262_v6 = vld [vmem:[%s2437_s24 + $0x60] sm:$0xff] }
  0x90   : > { %1000 = vmatprep.subr.mxu0 %v557_v7  ;;  %1160 = vmatpush2.msra.mxu1 %v622_v8  ;;  %v271_v7 = vld [vmem:[%s2437_s24 + $0xa8] sm:$0xff]  ;;  %v264_v8 = vld [vmem:[%s2437_s24 + $0x70] sm:$0xff] }
  0x91   : > { %1001 = vmatpush2.msra.mxu0 %v556_v9  ;;  %1161 = vmatprep.subr.mxu1 %v621_v10  ;;  %v273_v9 = vld [vmem:[%s2437_s24 + $0xb8] sm:$0xff]  ;;  %v270_v10 = vld [vmem:[%s2437_s24 + $0xa0] sm:$0xff] }
  0x92   : > { %1002 = vmatprep.subr.mxu0 %v555_v11  ;;  %1162 = vmatpush2.msra.mxu1 %v620_v12  ;;  %v279_v11 = vld [vmem:[%s2437_s24 + $0xe8] sm:$0xff]  ;;  %v272_v12 = vld [vmem:[%s2437_s24 + $0xb0] sm:$0xff] }
  0x93   : > { %770 = vmatprep.mubr.f32.mxu0 %v347_v13  ;;  %931 = vmatprep.mubr.f32.mxu1 %v349_v14  ;;  %v281_v13 = vld [vmem:[%s2437_s24 + $0xf8] sm:$0xff]  ;;  %v278_v14 = vld [vmem:[%s2437_s24 + $0xe0] sm:$0xff] }
  0x94   : > { %1003 = vmatpush2.msra.mxu0 %v554_v15  ;;  %1163 = vmatprep.subr.mxu1 %v619_v16  ;;  %v287_v15 = vld [vmem:[%s2437_s24 + $0x128] sm:$0xff]  ;;  %v280_v16 = vld [vmem:[%s2437_s24 + $0xf0] sm:$0xff] }
  0x95   : > { %771 = vmatmul.mubr.f32.gmra.mxu0 %v346_v17  ;;  %932 = vmatmul.mubr.f32.gmra.mxu1 %v348_v18  ;;  %v289_v17 = vld [vmem:[%s2437_s24 + $0x138] sm:$0xff]  ;;  %v286_v18 = vld [vmem:[%s2437_s24 + $0x120] sm:$0xff] }
  0x96   : > { %1004 = vmatprep.subr.mxu0 %v553_v19  ;;  %1164 = vmatpush2.msra.mxu1 %v618_v20  ;;  %v295_v19 = vld [vmem:[%s2437_s24 + $0x168] sm:$0xff]  ;;  %v288_v20 = vld [vmem:[%s2437_s24 + $0x130] sm:$0xff] }
  0x97   : > { %1005 = vmatpush2.msra.mxu0 %v552_v21  ;;  %1165 = vmatprep.subr.mxu1 %v617_v22  ;;  %v297_v21 = vld [vmem:[%s2437_s24 + $0x178] sm:$0xff]  ;;  %v294_v22 = vld [vmem:[%s2437_s24 + $0x160] sm:$0xff] }
  0x98   : > { %1006 = vmatprep.subr.mxu0 %v551_v23  ;;  %1166 = vmatpush2.msra.mxu1 %v616_v24  ;;  %v303_v23 = vld [vmem:[%s2437_s24 + $0x1a8] sm:$0xff]  ;;  %v296_v24 = vld [vmem:[%s2437_s24 + $0x170] sm:$0xff] }
  0x99   : > { %776 = vmatprep.mubr.f32.mxu0 %v355_v25  ;;  %937 = vmatprep.mubr.f32.mxu1 %v357_v26  ;;  %v305_v25 = vld [vmem:[%s2437_s24 + $0x1b8] sm:$0xff]  ;;  %v302_v26 = vld [vmem:[%s2437_s24 + $0x1a0] sm:$0xff] }
  0x9a   : > { %1007 = vmatpush2.msra.mxu0 %v550_v27  ;;  %1167 = vmatprep.subr.mxu1 %v615_v28  ;;  %v311_v27 = vld [vmem:[%s2437_s24 + $0x1e8] sm:$0xff]  ;;  %v304_v28 = vld [vmem:[%s2437_s24 + $0x1b0] sm:$0xff] }
  0x9b   : > { %777 = vmatmul.mubr.f32.gmra.mxu0 %v354_v29  ;;  %938 = vmatmul.mubr.f32.gmra.mxu1 %v356_v30  ;;  %v313_v29 = vld [vmem:[%s2437_s24 + $0x1f8] sm:$0xff]  ;;  %v310_v30 = vld [vmem:[%s2437_s24 + $0x1e0] sm:$0xff] }
  0x9c   : > { %1008 = vmatprep.subr.mxu0 %v549_v31  ;;  %1168 = vmatpush2.msra.mxu1 %v614_v32  ;;  %v319_v31 = vld [vmem:[%s2437_s24 + $0x228] sm:$0xff]  ;;  %v312_v32 = vld [vmem:[%s2437_s24 + $0x1f0] sm:$0xff] }
  0x9d   : > { %1009 = vmatpush2.msra.mxu0 %v548_v33  ;;  %1169 = vmatprep.subr.mxu1 %v613_v34  ;;  %v321_v33 = vld [vmem:[%s2437_s24 + $0x238] sm:$0xff]  ;;  %v318_v34 = vld [vmem:[%s2437_s24 + $0x220] sm:$0xff] }
  0x9e   : > { %1010 = vmatprep.subr.mxu0 %v547_v35  ;;  %1170 = vmatpush2.msra.mxu1 %v612_v36  ;;  %v327_v35 = vld [vmem:[%s2437_s24 + $0x268] sm:$0xff]  ;;  %v320_v36 = vld [vmem:[%s2437_s24 + $0x230] sm:$0xff] }
  0x9f   : > { %782 = vmatprep.mubr.f32.mxu0 %v363_v37  ;;  %943 = vmatprep.mubr.f32.mxu1 %v365_v38  ;;  %v329_v37 = vld [vmem:[%s2437_s24 + $0x278] sm:$0xff]  ;;  %v326_v38 = vld [vmem:[%s2437_s24 + $0x260] sm:$0xff] }
  0xa0   : > { %1011 = vmatpush2.msra.mxu0 %v546_v39  ;;  %1171 = vmatprep.subr.mxu1 %v611_v40  ;;  %v335_v39 = vld [vmem:[%s2437_s24 + $0x2a8] sm:$0xff]  ;;  %v328_v40 = vld [vmem:[%s2437_s24 + $0x270] sm:$0xff] }
  0xa1   : > { %783 = vmatmul.mubr.f32.gmra.mxu0 %v362_v41  ;;  %944 = vmatmul.mubr.f32.gmra.mxu1 %v364_v42  ;;  %v337_v41 = vld [vmem:[%s2437_s24 + $0x2b8] sm:$0xff]  ;;  %v334_v42 = vld [vmem:[%s2437_s24 + $0x2a0] sm:$0xff] }
  0xa2   : > { %1012 = vmatprep.subr.mxu0 %v545_v43  ;;  %1172 = vmatpush2.msra.mxu1 %v610_v44  ;;  %v343_v43 = vld [vmem:[%s2437_s24 + $0x2e8] sm:$0xff]  ;;  %v336_v44 = vld [vmem:[%s2437_s24 + $0x2b0] sm:$0xff] }
  0xa3   : > { %1013 = vmatpush2.msra.mxu0 %v544_v45  ;;  %1173 = vmatprep.subr.mxu1 %v609_v46  ;;  %v345_v45 = vld [vmem:[%s2437_s24 + $0x2f8] sm:$0xff]  ;;  %v342_v46 = vld [vmem:[%s2437_s24 + $0x2e0] sm:$0xff] }
  0xa4   : > { %1014 = vmatprep.subr.mxu0 %v543_v47  ;;  %1174 = vmatpush2.msra.mxu1 %v608_v48  ;;  %v351_v47 = vld [vmem:[%s2437_s24 + $0x328] sm:$0xff]  ;;  %v344_v48 = vld [vmem:[%s2437_s24 + $0x2f0] sm:$0xff] }
  0xa5   : > { %788 = vmatprep.mubr.f32.mxu0 %v371_v49  ;;  %949 = vmatprep.mubr.f32.mxu1 %v373_v50  ;;  %v353_v49 = vld [vmem:[%s2437_s24 + $0x338] sm:$0xff]  ;;  %v350_v50 = vld [vmem:[%s2437_s24 + $0x320] sm:$0xff] }
  0xa6   : > { %1015 = vmatpush2.msra.mxu0 %v542_v51  ;;  %1175 = vmatprep.subr.mxu1 %v607_v52  ;;  %v359_v51 = vld [vmem:[%s2437_s24 + $0x368] sm:$0xff]  ;;  %v352_v52 = vld [vmem:[%s2437_s24 + $0x330] sm:$0xff] }
  0xa7   : > { %789 = vmatmul.mubr.f32.gmra.mxu0 %v370_v53  ;;  %950 = vmatmul.mubr.f32.gmra.mxu1 %v372_v54  ;;  %v361_v53 = vld [vmem:[%s2437_s24 + $0x378] sm:$0xff]  ;;  %v358_v54 = vld [vmem:[%s2437_s24 + $0x360] sm:$0xff] }
  0xa8   : > { %1016 = vmatprep.subr.mxu0 %v541_v55  ;;  %1176 = vmatpush2.msra.mxu1 %v606_v56  ;;  %v367_v55 = vld [vmem:[%s2437_s24 + $0x3a8] sm:$0xff]  ;;  %v360_v56 = vld [vmem:[%s2437_s24 + $0x370] sm:$0xff] }
  0xa9   : > { %1017 = vmatpush2.msra.mxu0 %v540_v57  ;;  %1177 = vmatprep.subr.mxu1 %v605_v58  ;;  %v369_v57 = vld [vmem:[%s2437_s24 + $0x3b8] sm:$0xff]  ;;  %v366_v58 = vld [vmem:[%s2437_s24 + $0x3a0] sm:$0xff] }
  0xaa   : > { %1018 = vmatprep.subr.mxu0 %v539_v59  ;;  %1178 = vmatpush2.msra.mxu1 %v604_v60  ;;  %v375_v59 = vld [vmem:[%s2437_s24 + $0x3e8] sm:$0xff]  ;;  %v368_v60 = vld [vmem:[%s2437_s24 + $0x3b0] sm:$0xff] }
  0xab   : > { %1019 = vmatpush2.msra.mxu0 %v538_v61  ;;  %1020 = vmatprep.mubr.f32.mxu0 %v255_v62  ;;  %v377_v61 = vld [vmem:[%s2437_s24 + $0x3f8] sm:$0xff]  ;;  %v374_v62 = vld [vmem:[%s2437_s24 + $0x3e0] sm:$0xff] }
  0xac   : > { %1179 = vmatprep.subr.mxu1 %v603_v63  ;;  %1021 = vmatmul.mubr.f32.vlgmr.msra.gmra.mxu0 %v254_v0  ;;  %v376_v63 = vld [vmem:[%s2437_s24 + $0x3f0] sm:$0xff]  ;;  %s1962_s24 = sshll.u32 %s3551_s11, 3 }
  0xad   : > { %1180 = vmatpush2.msra.mxu1 %v602_v1  ;;  %1181 = vmatprep.mubr.f32.mxu1 %v257_v2  ;;  %s3343_s19 = scalar_lea.vmem %s3537_s2, %s1962_s24  ;;  %s3360_s21 = scalar_lea.vmem %s3538_s3, %s1962_s24 }
  0xae   : > { %1026 = vmatprep.mubr.f32.mxu0 %v263_v3  ;;  %1182 = vmatmul.mubr.f32.vlgmr.msra.gmra.mxu1 %v256_v4 }
  0xaf   : > { %1187 = vmatprep.mubr.f32.mxu1 %v265_v5 }
  0xb0   : > { %1027 = vmatmul.mubr.f32.gmra.mxu0 %v262_v6 }
  0xb1   : > { %1032 = vmatprep.mubr.f32.mxu0 %v271_v7 }
  0xb2   : > { %1188 = vmatmul.mubr.f32.gmra.mxu1 %v264_v8 }
  0xb3   : > { %1193 = vmatprep.mubr.f32.mxu1 %v273_v9 }
  0xb4   : > { %1033 = vmatmul.mubr.f32.gmra.mxu0 %v270_v10 }
  0xb5   : > { %1038 = vmatprep.mubr.f32.mxu0 %v279_v11 }
  0xb6   : > { %1194 = vmatmul.mubr.f32.gmra.mxu1 %v272_v12 }
  0xb7   : > { %1199 = vmatprep.mubr.f32.mxu1 %v281_v13 }
  0xb8   : > { %1039 = vmatmul.mubr.f32.gmra.mxu0 %v278_v14 }
  0xb9   : > { %1044 = vmatprep.mubr.f32.mxu0 %v287_v15 }
  0xba   : > { %1200 = vmatmul.mubr.f32.gmra.mxu1 %v280_v16 }
  0xbb   : > { %1205 = vmatprep.mubr.f32.mxu1 %v289_v17 }
  0xbc   : > { %1045 = vmatmul.mubr.f32.gmra.mxu0 %v286_v18 }
  0xbd   : > { %1050 = vmatprep.mubr.f32.mxu0 %v295_v19 }
  0xbe   : > { %1206 = vmatmul.mubr.f32.gmra.mxu1 %v288_v20 }
  0xbf   : > { %1211 = vmatprep.mubr.f32.mxu1 %v297_v21 }
  0xc0   : > { %1051 = vmatmul.mubr.f32.gmra.mxu0 %v294_v22 }
  0xc1   : > { %1056 = vmatprep.mubr.f32.mxu0 %v303_v23 }
  0xc2   : > { %1212 = vmatmul.mubr.f32.gmra.mxu1 %v296_v24 }
  0xc3   : > { %1217 = vmatprep.mubr.f32.mxu1 %v305_v25 }
  0xc4   : > { %1057 = vmatmul.mubr.f32.gmra.mxu0 %v302_v26 }
  0xc5   : > { %1062 = vmatprep.mubr.f32.mxu0 %v311_v27 }
  0xc6   : > { %1218 = vmatmul.mubr.f32.gmra.mxu1 %v304_v28 }
  0xc7   : > { %1223 = vmatprep.mubr.f32.mxu1 %v313_v29 }
  0xc8   : > { %1063 = vmatmul.mubr.f32.gmra.mxu0 %v310_v30 }
  0xc9   : > { %1068 = vmatprep.mubr.f32.mxu0 %v319_v31 }
  0xca   : > { %1224 = vmatmul.mubr.f32.gmra.mxu1 %v312_v32 }
  0xcb   : > { %1229 = vmatprep.mubr.f32.mxu1 %v321_v33 }
  0xcc   : > { %1069 = vmatmul.mubr.f32.gmra.mxu0 %v318_v34 }
  0xcd   : > { %1074 = vmatprep.mubr.f32.mxu0 %v327_v35 }
  0xce   : > { %1230 = vmatmul.mubr.f32.gmra.mxu1 %v320_v36 }
  0xcf   : > { %1235 = vmatprep.mubr.f32.mxu1 %v329_v37 }
  0xd0   : > { %1075 = vmatmul.mubr.f32.gmra.mxu0 %v326_v38 }
  0xd1   : > { %1080 = vmatprep.mubr.f32.mxu0 %v335_v39 }
  0xd2   : > { %1236 = vmatmul.mubr.f32.gmra.mxu1 %v328_v40 }
  0xd3   : > { %1241 = vmatprep.mubr.f32.mxu1 %v337_v41 }
  0xd4   : > { %1081 = vmatmul.mubr.f32.gmra.mxu0 %v334_v42 }
  0xd5   : > { %1086 = vmatprep.mubr.f32.mxu0 %v343_v43 }
  0xd6   : > { %1242 = vmatmul.mubr.f32.gmra.mxu1 %v336_v44 }
  0xd7   : > { %1247 = vmatprep.mubr.f32.mxu1 %v345_v45 }
  0xd8   : > { %1087 = vmatmul.mubr.f32.gmra.mxu0 %v342_v46 }
  0xd9   : > { %1092 = vmatprep.mubr.f32.mxu0 %v351_v47 }
  0xda   : > { %1248 = vmatmul.mubr.f32.gmra.mxu1 %v344_v48 }
  0xdb   : > { %1253 = vmatprep.mubr.f32.mxu1 %v353_v49 }
  0xdc   : > { %1093 = vmatmul.mubr.f32.gmra.mxu0 %v350_v50 }
  0xdd   : > { %1098 = vmatprep.mubr.f32.mxu0 %v359_v51 }
  0xde   : > { %1254 = vmatmul.mubr.f32.gmra.mxu1 %v352_v52 }
  0xdf   : > { %1259 = vmatprep.mubr.f32.mxu1 %v361_v53 }
  0xe0   : > { %1099 = vmatmul.mubr.f32.gmra.mxu0 %v358_v54 }
  0xe1   : > { %1104 = vmatprep.mubr.f32.mxu0 %v367_v55 }
  0xe2   : > { %1260 = vmatmul.mubr.f32.gmra.mxu1 %v360_v56 }
  0xe3   : > { %1265 = vmatprep.mubr.f32.mxu1 %v369_v57 }
  0xe4   : > { %1105 = vmatmul.mubr.f32.gmra.mxu0 %v366_v58 }
  0xe5   : > { %1110 = vmatprep.mubr.f32.mxu0 %v375_v59 }
  0xe6   : > { %1266 = vmatmul.mubr.f32.gmra.mxu1 %v368_v60 }
  0xe7   : > { %1271 = vmatprep.mubr.f32.mxu1 %v377_v61 }
  0xe8   : > { %1111 = vmatmul.mubr.f32.gmra.mxu0 %v374_v62 }
  0xea   : > { %1272 = vmatmul.mubr.f32.gmra.mxu1 %v376_v63 }
 0x10d   : > { %v2969_v0 = vpop.f32.mrf.mxu0 }
 0x10e   : > { %v2971_v1 = vpop.f32.mrf.mxu1 }
 0x10f   : > { %v2973_v2 = vpop.f32.mrf.mxu0 }
 0x110   : > { %v2975_v3 = vpop.f32.mrf.mxu1 }
 0x113   : > { %v2977_v4 = vpop.f32.mrf.mxu0  ;;  %v2979_v5 = vpop.f32.mrf.mxu1 }
 0x115   : > { %v2981_v6 = vpop.f32.mrf.mxu0  ;;  %v2983_v7 = vpop.f32.mrf.mxu1 }
 0x119   : > { %v712_v8 = vpop.f32.mrf.mxu0  ;;  %v873_v9 = vpop.f32.mrf.mxu1 }
 0x11a   : > { %v2985_v10 = vadd.f32 %v873_v9, %v712_v8 }
 0x11b   : > { %v2987_v11 = vpop.f32.mrf.mxu0  ;;  %v2989_v12 = vpop.f32.mrf.mxu1 }
 0x11f   : > { %v718_v13 = vpop.f32.mrf.mxu0  ;;  %v879_v14 = vpop.f32.mrf.mxu1 }
 0x120   : > { %v2991_v15 = vadd.f32 %v879_v14, %v718_v13 }
 0x121   : > { %v2993_v16 = vpop.f32.mrf.mxu0  ;;  %v2995_v17 = vpop.f32.mrf.mxu1 }
 0x125   : > { %v2997_v18 = vpop.f32.mrf.mxu0  ;;  %v2999_v19 = vpop.f32.mrf.mxu1 }
 0x127   : > { %v3001_v20 = vpop.f32.mrf.mxu0  ;;  %v3003_v21 = vpop.f32.mrf.mxu1 }
 0x12b   : > { %v730_v22 = vpop.f32.mrf.mxu0  ;;  %v891_v23 = vpop.f32.mrf.mxu1 }
 0x12c   : > { %v3005_v24 = vadd.f32 %v891_v23, %v730_v22 }
 0x12d   : > { %v3007_v25 = vpop.f32.mrf.mxu0  ;;  %v3009_v26 = vpop.f32.mrf.mxu1 }
 0x131   : > { %v3011_v27 = vpop.f32.mrf.mxu0  ;;  %v3013_v28 = vpop.f32.mrf.mxu1 }
 0x133   : > { %v3015_v29 = vpop.f32.mrf.mxu0  ;;  %v3017_v30 = vpop.f32.mrf.mxu1 }
 0x137   : > { %v742_v31 = vpop.f32.mrf.mxu0  ;;  %v903_v32 = vpop.f32.mrf.mxu1 }
 0x138   : > { %v3019_v33 = vadd.f32 %v903_v32, %v742_v31 }
 0x139   : > { %v3021_v34 = vpop.f32.mrf.mxu0  ;;  %v3023_v35 = vpop.f32.mrf.mxu1 }
 0x13d   : > { %v3025_v36 = vpop.f32.mrf.mxu0  ;;  %v3027_v37 = vpop.f32.mrf.mxu1 }
 0x13f   : > { %v3029_v38 = vpop.f32.mrf.mxu0  ;;  %v3031_v39 = vpop.f32.mrf.mxu1 }
 0x143   : > { %v754_v40 = vpop.f32.mrf.mxu0  ;;  %v915_v41 = vpop.f32.mrf.mxu1 }
 0x144   : > { %v3033_v42 = vadd.f32 %v915_v41, %v754_v40  ;;  %v862_v40 = vadd.f32 %v2971_v1, %v2969_v0 }
 0x145   : > { %v3035_v43 = vpop.f32.mrf.mxu0  ;;  %v3037_v44 = vpop.f32.mrf.mxu1 }
 0x149   : > { %v3039_v45 = vpop.f32.mrf.mxu0  ;;  %v3041_v46 = vpop.f32.mrf.mxu1 }
 0x14b   : > { %v3043_v47 = vpop.f32.mrf.mxu0  ;;  %v3045_v48 = vpop.f32.mrf.mxu1 }
 0x14f   : > { %v766_v49 = vpop.f32.mrf.mxu0  ;;  %v927_v50 = vpop.f32.mrf.mxu1 }
 0x150   : > { %v3047_v51 = vadd.f32 %v927_v50, %v766_v49  ;;  %v864_v49 = vadd.f32 %v2975_v3, %v2973_v2 }
 0x151   : > { %v3049_v52 = vpop.f32.mrf.mxu0  ;;  %v3051_v53 = vpop.f32.mrf.mxu1 }
 0x155   : > { %v3053_v54 = vpop.f32.mrf.mxu0  ;;  %v3055_v55 = vpop.f32.mrf.mxu1 }
 0x157   : > { %v3057_v56 = vpop.f32.mrf.mxu0  ;;  %v3059_v57 = vpop.f32.mrf.mxu1 }
 0x15b   : > { %v778_v58 = vpop.f32.mrf.mxu0  ;;  %v939_v59 = vpop.f32.mrf.mxu1 }
 0x15c   : > { %v3061_v60 = vadd.f32 %v939_v59, %v778_v58 }
 0x15d   : > { %v3063_v61 = vpop.f32.mrf.mxu0  ;;  %v3065_v62 = vpop.f32.mrf.mxu1 }
 0x161   : > { %v3067_v63 = vpop.f32.mrf.mxu0  ;;  %v3069_v8 = vpop.f32.mrf.mxu1 }
 0x163   : > { %v3071_v9 = vpop.f32.mrf.mxu0  ;;  %v3073_v13 = vpop.f32.mrf.mxu1 }
 0x164   : > { %3540 = vst [vmem:[#allocation2_spill] sm:$0xff] %v3071_v9  ;;  %3541 = vst [vmem:[#allocation3_spill] sm:$0xff] %v3073_v13  ;;  %v868_v13 = vadd.f32 %v2979_v5, %v2977_v4 }
 0x167   : > { %v790_v14 = vpop.f32.mrf.mxu0  ;;  %v951_v22 = vpop.f32.mrf.mxu1 }
 0x168   : > { %v3075_v23 = vadd.f32 %v951_v22, %v790_v14 }
 0x169   : > { %v3077_v31 = vpop.f32.mrf.mxu0  ;;  %v3079_v32 = vpop.f32.mrf.mxu1 }
 0x16a   : > { %3542 = vst [vmem:[#allocation4_spill] sm:$0xff] %v3075_v23  ;;  %3543 = vst [vmem:[#allocation5_spill] sm:$0xff] %v3077_v31  ;;  %v870_v23 = vadd.f32 %v2983_v7, %v2981_v6  ;;  %v876_v7 = vadd.f32 %v2989_v12, %v2987_v11  ;;  %v882_v12 = vadd.f32 %v2995_v17, %v2993_v16 }
 0x16b   : > { %3544 = vst [vmem:[#allocation6_spill] sm:$0xff] %v3079_v32  ;;  %v886_v17 = vadd.f32 %v2999_v19, %v2997_v18 }
 0x16c   : > { %v1022_v41 = vpop.f32.mrf.mxu0 }
 0x16d   : > { %v1023_v50 = vadd.f32 %v1022_v41, %v862_v40 }
 0x16e   : > { %v1183_v58 = vpop.f32.mrf.mxu1  ;;  %v1024_v59 = vpop.f32.mrf.mxu0 }
 0x16f   : > { %v1025_v9 = vadd.f32 %v1024_v59, %v864_v49  ;;  %v3091_v1 = vadd.f32 %v1183_v58, %v1023_v50 }
 0x170   : > { %v1185_v14 = vpop.f32.mrf.mxu1  ;;  %v1028_v22 = vpop.f32.mrf.mxu0 }
 0x171   : > { %v3089_v32 = vadd.f32 %v1185_v14, %v1025_v9  ;;  %v1029_v0 = vadd.f32 %v1028_v22, %v868_v13  ;;  %v1359_v58 = vmul.f32 %v3091_v1, %v3091_v1 }
 0x172   : > { %v1030_v31 = vpop.f32.mrf.mxu0  ;;  %v1189_v2 = vpop.f32.mrf.mxu1 }
 0x173   : > { %v1031_v3 = vadd.f32 %v1030_v31, %v870_v23  ;;  %v1279_v40 = vsel %vm1278_vm0, %v3089_v32, 0.0  ;;  %v1360_v4 = vmul.f32 %v3089_v32, %v3089_v32  ;;  %v3097_v5 = vadd.f32 %v1189_v2, %v1029_v0 }
 0x174   : > { %v1034_v41 = vpop.f32.mrf.mxu0  ;;  %v1191_v49 = vpop.f32.mrf.mxu1  ;;  %v1280_v6 = vadd.f32 %v1279_v40, %v3091_v1 }
 0x175   : > { %v3102_v9 = vadd.f32 %v1191_v49, %v1031_v3  ;;  %v1391_v13 = vsel %vm1278_vm0, %v1360_v4, 0.0  ;;  %v1035_v23 = vadd.f32 %v1034_v41, %v2985_v10  ;;  %v1361_v11 = vmul.f32 %v3097_v5, %v3097_v5 }
 0x176   : > { %v1036_v31 = vpop.f32.mrf.mxu0  ;;  %v1195_v50 = vpop.f32.mrf.mxu1  ;;  %1281 = vadd.xlane.f32.xlu0 %v1280_v6  ;;  %v1392_v2 = vadd.f32 %v1391_v13, %v1359_v58 }
 0x177   : > { %v1037_v59 = vadd.f32 %v1036_v31, %v876_v7  ;;  %v1362_v14 = vmul.f32 %v3102_v9, %v3102_v9  ;;  %v1283_v40 = vsel %vm1278_vm0, %v3102_v9, 0.0  ;;  %v3119_v4 = vadd.f32 %v1195_v50, %v1035_v23 }
 0x178   : > { %v1040_v22 = vpop.f32.mrf.mxu0  ;;  %v1197_v0 = vpop.f32.mrf.mxu1  ;;  %v1284_v23 = vadd.f32 %v1283_v40, %v3097_v5  ;;  %v888_v50 = vadd.f32 %v3003_v21, %v3001_v20 }
 0x179   : > { %v3114_v10 = vadd.f32 %v1197_v0, %v1037_v59  ;;  %v1395_v3 = vsel %vm1278_vm0, %v1362_v14, 0.0  ;;  %v1041_v31 = vadd.f32 %v1040_v22, %v2991_v15  ;;  %v1363_v15 = vmul.f32 %v3119_v4, %v3119_v4 }
 0x17a   : > { %v1042_v41 = vpop.f32.mrf.mxu0  ;;  %v1201_v49 = vpop.f32.mrf.mxu1  ;;  %1393 = vadd.xlane.f32.xlu0 %v1392_v2  ;;  %v1396_v6 = vadd.f32 %v1395_v3, %v1361_v11 }
 0x17b   : > { %v1043_v7 = vadd.f32 %v1042_v41, %v882_v12  ;;  %v1287_v13 = vsel %vm1278_vm0, %v3114_v10, 0.0  ;;  %v1364_v16 = vmul.f32 %v3114_v10, %v3114_v10  ;;  %v3141_v21 = vadd.f32 %v1201_v49, %v1041_v31 }
 0x17c   : > { %v1046_v58 = vpop.f32.mrf.mxu0  ;;  %v1203_v59 = vpop.f32.mrf.mxu1  ;;  %1397 = vadd.xlane.f32.xlu1 %v1396_v6  ;;  %v1288_v18 = vadd.f32 %v1287_v13, %v3119_v4  ;;  %v894_v6 = vadd.f32 %v3009_v26, %v3007_v25  ;;  %v898_v25 = vadd.f32 %v3013_v28, %v3011_v27 }
 0x17d   : > { %v3131_v14 = vadd.f32 %v1203_v59, %v1043_v7  ;;  %v1399_v0 = vsel %vm1278_vm0, %v1364_v16, 0.0  ;;  %v1047_v2 = vadd.f32 %v1046_v58, %v886_v17 }
 0x17e   : > { %v1048_v11 = vpop.f32.mrf.mxu0  ;;  %v1207_v12 = vpop.f32.mrf.mxu1  ;;  %1285 = vadd.xlane.f32.xlu0 %v1284_v23  ;;  %v1400_v41 = vadd.f32 %v1399_v0, %v1363_v15 }
 0x17f   : > { %v1049_v19 = vadd.f32 %v1048_v11, %v888_v50  ;;  %v1291_v22 = vsel %vm1278_vm0, %v3131_v14, 0.0  ;;  %v1366_v20 = vmul.f32 %v3131_v14, %v3131_v14  ;;  %v3147_v13 = vadd.f32 %v1207_v12, %v1047_v2 }
 0x180   : > { %v1052_v3 = vpop.f32.mrf.mxu0  ;;  %v1209_v40 = vpop.f32.mrf.mxu1  ;;  %1289 = vadd.xlane.f32.xlu1 %v1288_v18  ;;  %v1292_v58 = vadd.f32 %v1291_v22, %v3141_v21  ;;  %v1365_v11 = vmul.f32 %v3141_v21, %v3141_v21  ;;  %v900_v12 = vadd.f32 %v3017_v30, %v3015_v29 }
 0x181   : > { %v3145_v7 = vadd.f32 %v1209_v40, %v1049_v19  ;;  %v1403_v31 = vsel %vm1278_vm0, %v1366_v20, 0.0  ;;  %v1053_v26 = vadd.f32 %v1052_v3, %v3005_v24  ;;  %v1367_v28 = vmul.f32 %v3147_v13, %v3147_v13 }
 0x182   : > { %v1054_v16 = vpop.f32.mrf.mxu0  ;;  %v1213_v17 = vpop.f32.mrf.mxu1  ;;  %1401 = vadd.xlane.f32.xlu0 %v1400_v41  ;;  %v1404_v24 = vadd.f32 %v1403_v31, %v1365_v11 }
 0x183   : > { %v1055_v59 = vadd.f32 %v1054_v16, %v894_v6  ;;  %v1295_v49 = vsel %vm1278_vm0, %v3145_v7, 0.0  ;;  %v1368_v23 = vmul.f32 %v3145_v7, %v3145_v7  ;;  %v3172_v29 = vadd.f32 %v1213_v17, %v1053_v26 }
 0x184   : > { %v1058_v50 = vpop.f32.mrf.mxu0  ;;  %v1215_v0 = vpop.f32.mrf.mxu1  ;;  %1293 = vadd.xlane.f32.xlu1 %v1292_v58  ;;  %v1296_v2 = vadd.f32 %v1295_v49, %v3147_v13  ;;  %v906_v16 = vadd.f32 %v3023_v35, %v3021_v34  ;;  %v910_v34 = vadd.f32 %v3027_v37, %v3025_v36 }
 0x185   : > { %v3163_v18 = vadd.f32 %v1215_v0, %v1055_v59  ;;  %v1407_v15 = vsel %vm1278_vm0, %v1368_v23, 0.0  ;;  %v1059_v19 = vadd.f32 %v1058_v50, %v898_v25 }
 0x186   : > { %v1060_v22 = vpop.f32.mrf.mxu0  ;;  %v1219_v27 = vpop.f32.mrf.mxu1  ;;  %1297 = vadd.xlane.f32.xlu0 %v1296_v2  ;;  %v1408_v6 = vadd.f32 %v1407_v15, %v1367_v28  ;;  %v912_v15 = vadd.f32 %v3031_v39, %v3029_v38 }
 0x187   : > { %v1061_v20 = vadd.f32 %v1060_v22, %v900_v12  ;;  %v1299_v3 = vsel %vm1278_vm0, %v3163_v18, 0.0  ;;  %v1370_v40 = vmul.f32 %v3163_v18, %v3163_v18  ;;  %v3178_v59 = vadd.f32 %v1219_v27, %v1059_v19 }
 0x188   : > { %v1064_v30 = vpop.f32.mrf.mxu0  ;;  %v1221_v41 = vpop.f32.mrf.mxu1  ;;  %1405 = vadd.xlane.f32.xlu1 %v1404_v24  ;;  %v1300_v23 = vadd.f32 %v1299_v3, %v3172_v29  ;;  %v1369_v12 = vmul.f32 %v3172_v29, %v3172_v29 }
 0x189   : > { %v3176_v58 = vadd.f32 %v1221_v41, %v1061_v20  ;;  %v1411_v26 = vsel %vm1278_vm0, %v1370_v40, 0.0  ;;  %v1065_v35 = vadd.f32 %v1064_v30, %v3019_v33  ;;  %v1371_v37 = vmul.f32 %v3178_v59, %v3178_v59 }
 0x18a   : > { %v1066_v49 = vpop.f32.mrf.mxu0  ;;  %v1225_v31 = vpop.f32.mrf.mxu1  ;;  %1409 = vadd.xlane.f32.xlu0 %v1408_v6  ;;  %v1412_v33 = vadd.f32 %v1411_v26, %v1369_v12  ;;  %v918_v41 = vadd.f32 %v3037_v44, %v3035_v43  ;;  %v922_v43 = vadd.f32 %v3041_v46, %v3039_v45 }
 0x18b   : > { %v1067_v25 = vadd.f32 %v1066_v49, %v906_v16  ;;  %v1303_v17 = vsel %vm1278_vm0, %v3176_v58, 0.0  ;;  %v1372_v50 = vmul.f32 %v3176_v58, %v3176_v58  ;;  %v3203_v38 = vadd.f32 %v1225_v31, %v1065_v35 }
 0x18c   : > { %v1070_v0 = vpop.f32.mrf.mxu0  ;;  %v1227_v2 = vpop.f32.mrf.mxu1  ;;  %1301 = vadd.xlane.f32.xlu1 %v1300_v23  ;;  %v1304_v11 = vadd.f32 %v1303_v17, %v3178_v59 }
 0x18d   : > { %v3194_v19 = vadd.f32 %v1227_v2, %v1067_v25  ;;  %v1415_v22 = vsel %vm1278_vm0, %v1372_v50, 0.0  ;;  %v1071_v27 = vadd.f32 %v1070_v0, %v910_v34  ;;  %v1373_v2 = vmul.f32 %v3203_v38, %v3203_v38 }
 0x18e   : > { %v1072_v24 = vpop.f32.mrf.mxu0  ;;  %v1231_v36 = vpop.f32.mrf.mxu1  ;;  %1305 = vadd.xlane.f32.xlu0 %v1304_v11  ;;  %v1416_v30 = vadd.f32 %v1415_v22, %v1371_v37  ;;  %v924_v11 = vadd.f32 %v3045_v48, %v3043_v47 }
 0x18f   : > { %v1073_v28 = vadd.f32 %v1072_v24, %v912_v15  ;;  %v1307_v20 = vsel %vm1278_vm0, %v3194_v19, 0.0  ;;  %v1374_v3 = vmul.f32 %v3194_v19, %v3194_v19  ;;  %v3209_v16 = vadd.f32 %v1231_v36, %v1071_v27 }
 0x190   : > { %v1076_v39 = vpop.f32.mrf.mxu0  ;;  %v1233_v40 = vpop.f32.mrf.mxu1  ;;  %1413 = vadd.xlane.f32.xlu1 %v1412_v33  ;;  %v1308_v25 = vadd.f32 %v1307_v20, %v3203_v38  ;;  %v930_v20 = vadd.f32 %v3051_v53, %v3049_v52  ;;  %v934_v52 = vadd.f32 %v3055_v55, %v3053_v54 }
 0x191   : > { %v3207_v6 = vadd.f32 %v1233_v40, %v1073_v28  ;;  %v1419_v26 = vsel %vm1278_vm0, %v1374_v3, 0.0  ;;  %v1077_v44 = vadd.f32 %v1076_v39, %v3033_v42  ;;  %v1375_v46 = vmul.f32 %v3209_v16, %v3209_v16 }
 0x192   : > { %v1078_v49 = vpop.f32.mrf.mxu0  ;;  %v1237_v23 = vpop.f32.mrf.mxu1  ;;  %1417 = vadd.xlane.f32.xlu0 %v1416_v30  ;;  %v1420_v42 = vadd.f32 %v1419_v26, %v1373_v2 }
 0x193   : > { %v1079_v17 = vadd.f32 %v1078_v49, %v918_v41  ;;  %v1311_v31 = vsel %vm1278_vm0, %v3207_v6, 0.0  ;;  %v1376_v50 = vmul.f32 %v3207_v6, %v3207_v6  ;;  %v3234_v47 = vadd.f32 %v1237_v23, %v1077_v44 }
 0x194   : > { %v1082_v34 = vpop.f32.mrf.mxu0  ;;  %v1239_v35 = vpop.f32.mrf.mxu1  ;;  %1309 = vadd.xlane.f32.xlu1 %v1308_v25  ;;  %v1312_v0 = vadd.f32 %v1311_v31, %v3209_v16  ;;  %v2023_v31 = vmov 0  }
 0x195   : > { %v3225_v12 = vadd.f32 %v1239_v35, %v1079_v17  ;;  %v1423_v15 = vsel %vm1278_vm0, %v1376_v50, 0.0  ;;  %v1083_v22 = vadd.f32 %v1082_v34, %v922_v43  ;;  %1981 = vset.pattern.permute.xlu0 %v2023_v31  ;;  %1982 = vset.pattern.permute.xlu1 %v2023_v31  ;;  %v1377_v44 = vmul.f32 %v3234_v47, %v3234_v47  ;;  %v3546_v31 = vld [vmem:[#allocation3_spill] sm:$0xff] }
 0x196   : > { %v1084_v27 = vpop.f32.mrf.mxu0  ;;  %v1243_v45 = vpop.f32.mrf.mxu1  ;;  %1313 = vadd.xlane.f32.xlu0 %v1312_v0  ;;  %v1424_v28 = vadd.f32 %v1423_v15, %v1375_v46  ;;  %v936_v34 = vadd.f32 %v3059_v57, %v3057_v56  ;;  %v942_v46 = vadd.f32 %v3065_v62, %v3063_v61  ;;  %v946_v61 = vadd.f32 %v3069_v8, %v3067_v63 }
 0x197   : > { %v1085_v24 = vadd.f32 %v1084_v27, %v924_v11  ;;  %v1315_v36 = vsel %vm1278_vm0, %v3225_v12, 0.0  ;;  %v1378_v33 = vmul.f32 %v3225_v12, %v3225_v12  ;;  %v3240_v39 = vadd.f32 %v1243_v45, %v1083_v22 }
 0x198   : > { %v1088_v48 = vpop.f32.mrf.mxu0  ;;  %v1245_v37 = vpop.f32.mrf.mxu1  ;;  %1421 = vadd.xlane.f32.xlu1 %v1420_v42  ;;  %v1316_v41 = vadd.f32 %v1315_v36, %v3234_v47 }
 0x199   : > { %v3238_v3 = vadd.f32 %v1245_v37, %v1085_v24  ;;  %v1427_v25 = vsel %vm1278_vm0, %v1378_v33, 0.0  ;;  %v1089_v53 = vadd.f32 %v1088_v48, %v3047_v51  ;;  %v1379_v55 = vmul.f32 %v3240_v39, %v3240_v39 }
 0x19a   : > { %v1090_v40 = vpop.f32.mrf.mxu0  ;;  %v1249_v30 = vpop.f32.mrf.mxu1  ;;  %1425 = vadd.xlane.f32.xlu0 %v1424_v28  ;;  %v1428_v51 = vadd.f32 %v1427_v25, %v1377_v44 }
 0x19b   : > { %v1091_v49 = vadd.f32 %v1090_v40, %v930_v20  ;;  %v1319_v23 = vsel %vm1278_vm0, %v3238_v3, 0.0  ;;  %v1380_v17 = vmul.f32 %v3238_v3, %v3238_v3  ;;  %v3265_v56 = vadd.f32 %v1249_v30, %v1089_v53 }
 0x19c   : > { %v1094_v26 = vpop.f32.mrf.mxu0  ;;  %v1251_v50 = vpop.f32.mrf.mxu1  ;;  %1317 = vadd.xlane.f32.xlu1 %v1316_v41  ;;  %v1320_v43 = vadd.f32 %v1319_v23, %v3240_v39 }
 0x19d   : > { %v3256_v35 = vadd.f32 %v1251_v50, %v1091_v49  ;;  %v1431_v0 = vsel %vm1278_vm0, %v1380_v17, 0.0  ;;  %v1095_v2 = vadd.f32 %v1094_v26, %v934_v52  ;;  %v1381_v25 = vmul.f32 %v3265_v56, %v3265_v56  ;;  %v3545_v17 = vld [vmem:[#allocation2_spill] sm:$0xff] }
 0x19e   : > { %v1096_v11 = vpop.f32.mrf.mxu0  ;;  %v1255_v54 = vpop.f32.mrf.mxu1  ;;  %1321 = vadd.xlane.f32.xlu0 %v1320_v43  ;;  %v1432_v42 = vadd.f32 %v1431_v0, %v1379_v55  ;;  %v948_v52 = vadd.f32 %v3546_v31, %v3545_v17  ;;  %v3547_v55 = vld [vmem:[#allocation5_spill] sm:$0xff] }
 0x19f   : > { %v1097_v15 = vadd.f32 %v1096_v11, %v936_v34  ;;  %v1323_v22 = vsel %vm1278_vm0, %v3256_v35, 0.0  ;;  %v1382_v27 = vmul.f32 %v3256_v35, %v3256_v35  ;;  %v3271_v36 = vadd.f32 %v1255_v54, %v1095_v2 }
 0x1a0   : > { %v1100_v57 = vpop.f32.mrf.mxu0  ;;  %v1257_v45 = vpop.f32.mrf.mxu1  ;;  %1429 = vadd.xlane.f32.xlu1 %v1428_v51  ;;  %v1324_v37 = vadd.f32 %v1323_v22, %v3265_v56 }
 0x1a1   : > { %v3269_v24 = vadd.f32 %v1257_v45, %v1097_v15  ;;  %v1435_v40 = vsel %vm1278_vm0, %v1382_v27, 0.0  ;;  %v1101_v62 = vadd.f32 %v1100_v57, %v3061_v60  ;;  %v1383_v8 = vmul.f32 %v3271_v36, %v3271_v36  ;;  %v3548_v15 = vld [vmem:[#allocation6_spill] sm:$0xff] }
 0x1a2   : > { %v1102_v33 = vpop.f32.mrf.mxu0  ;;  %v1261_v48 = vpop.f32.mrf.mxu1  ;;  %1433 = vadd.xlane.f32.xlu0 %v1432_v42  ;;  %v1436_v60 = vadd.f32 %v1435_v40, %v1381_v25  ;;  %v954_v22 = vadd.f32 %v3548_v15, %v3547_v55 }
 0x1a3   : > { %v1103_v28 = vadd.f32 %v1102_v33, %v942_v46  ;;  %v1327_v20 = vsel %vm1278_vm0, %v3269_v24, 0.0  ;;  %v1384_v30 = vmul.f32 %v3269_v24, %v3269_v24  ;;  %v3296_v2 = vadd.f32 %v1261_v48, %v1101_v62 }
 0x1a4   : > { %v1106_v41 = vpop.f32.mrf.mxu0  ;;  %v1263_v49 = vpop.f32.mrf.mxu1  ;;  %1325 = vadd.xlane.f32.xlu1 %v1324_v37  ;;  %v1328_v23 = vadd.f32 %v1327_v20, %v3271_v36  ;;  %v3549_v20 = vld [vmem:[#allocation4_spill] sm:$0xff] }
 0x1a5   : > { %v3287_v53 = vadd.f32 %v1263_v49, %v1103_v28  ;;  %v1439_v26 = vsel %vm1278_vm0, %v1384_v30, 0.0  ;;  %v1107_v50 = vadd.f32 %v1106_v41, %v946_v61  ;;  %v1385_v62 = vmul.f32 %v3296_v2, %v3296_v2 }
 0x1a6   : > { %v1108_v43 = vpop.f32.mrf.mxu0  ;;  %v1267_v63 = vpop.f32.mrf.mxu1  ;;  %1329 = vadd.xlane.f32.xlu0 %v1328_v23  ;;  %v1440_v51 = vadd.f32 %v1439_v26, %v1383_v8 }
 0x1a7   : > { %v1109_v44 = vadd.f32 %v1108_v43, %v948_v52  ;;  %v1331_v34 = vsel %vm1278_vm0, %v3287_v53, 0.0  ;;  %v1386_v0 = vmul.f32 %v3287_v53, %v3287_v53  ;;  %v3302_v57 = vadd.f32 %v1267_v63, %v1107_v50 }
 0x1a8   : > { %v1112_v11 = vpop.f32.mrf.mxu0  ;;  %v1269_v54 = vpop.f32.mrf.mxu1  ;;  %1437 = vadd.xlane.f32.xlu1 %v1436_v60  ;;  %v1332_v46 = vadd.f32 %v1331_v34, %v3296_v2 }
 0x1a9   : > { %v3300_v27 = vadd.f32 %v1269_v54, %v1109_v44  ;;  %v1443_v37 = vsel %vm1278_vm0, %v1386_v0, 0.0  ;;  %v1113_v40 = vadd.f32 %v1112_v11, %v3549_v20  ;;  %v1387_v25 = vmul.f32 %v3302_v57, %v3302_v57 }
 0x1aa   : > { %v1114_v45 = vpop.f32.mrf.mxu0  ;;  %v1273_v42 = vpop.f32.mrf.mxu1  ;;  %1441 = vadd.xlane.f32.xlu0 %v1440_v51  ;;  %v1444_v23 = vadd.f32 %v1443_v37, %v1385_v62 }
 0x1ab   : > { %v1115_v33 = vadd.f32 %v1114_v45, %v954_v22  ;;  %v1335_v48 = vsel %vm1278_vm0, %v3300_v27, 0.0  ;;  %v1388_v28 = vmul.f32 %v3300_v27, %v3300_v27  ;;  %v3323_v52 = vadd.f32 %v1273_v42, %v1113_v40 }
 0x1ac   : > { %v1275_v30 = vpop.f32.mrf.mxu1  ;;  %1333 = vadd.xlane.f32.xlu1 %v1332_v46  ;;  %v1336_v61 = vadd.f32 %v1335_v48, %v3302_v57 }
 0x1ad   : > { %v3314_v41 = vadd.f32 %v1275_v30, %v1115_v33  ;;  %v1447_v49 = vsel %vm1278_vm0, %v1388_v28, 0.0  ;;  %v1389_v63 = vmul.f32 %v3323_v52, %v3323_v52 }
 0x1ae   : > { %1337 = vadd.xlane.f32.xlu0 %v1336_v61  ;;  %v1448_v26 = vadd.f32 %v1447_v49, %v1387_v25 }
 0x1af   : > { %v1339_v17 = vsel %vm1278_vm0, %v3314_v41, 0.0  ;;  %v1390_v31 = vmul.f32 %v3314_v41, %v3314_v41 }
 0x1b0   : > { %1445 = vadd.xlane.f32.xlu1 %v1444_v23  ;;  %v1340_v50 = vadd.f32 %v1339_v17, %v3323_v52 }
 0x1b1   : > { %v1451_v43 = vsel %vm1278_vm0, %v1390_v31, 0.0 }
 0x1b2   : > { %1449 = vadd.xlane.f32.xlu0 %v1448_v26  ;;  %v1452_v60 = vadd.f32 %v1451_v43, %v1389_v63 }
 0x1b4   : > { %1341 = vadd.xlane.f32.xlu1 %v1340_v50 }
 0x1b8   : > { %1453 = vadd.xlane.f32.xlu1 %v1452_v60 }
 0x1ff   : > { %v1282_v8 = vpop.xlane.xlu0 %1281 }
 0x200   : > { %v1343_v44 = vmul.f32 0.0051020407, %v1282_v8 }
 0x202   : > { %v1471_v0 = vmul.f32 %v1343_v44, %v1343_v44 }
 0x203   : > { %v1394_v34 = vpop.xlane.xlu0 %1393 }
 0x204   : > { %v1455_v11 = vmul.f32 0.0051020407, %v1394_v34 }
 0x205   : > { %v1398_v54 = vpop.xlane.xlu1 %1397 }
 0x206   : > { %v1487_v51 = vsub.f32 %v1455_v11, %v1471_v0  ;;  %v1456_v42 = vmul.f32 0.0051020407, %v1398_v54  ;;  %v1535_v0 = vld [vmem:[%s3343_s19] sm:$0xff] }
 0x207   : > { %v1286_v55 = vpop.xlane.xlu0 %1285 }
 0x208   : > { %v1503_v15 = vadd.f32 1e-05, %v1487_v51  ;;  %v1344_v22 = vmul.f32 0.0051020407, %v1286_v55 }
 0x209   : > { %v1290_v45 = vpop.xlane.xlu1 %1289 }
 0x20a   : > { %1983 = vrsqrt.f32 %v1503_v15  ;;  %v1472_v46 = vmul.f32 %v1344_v22, %v1344_v22  ;;  %v3329_v33 = vmul.f32 0.0051020407, %v1290_v45 }
 0x20b   : > { %v1402_v48 = vpop.xlane.xlu0 %1401 }
 0x20c   : > { %v1488_v37 = vsub.f32 %v1456_v42, %v1472_v46  ;;  %v1473_v28 = vmul.f32 %v3329_v33, %v3329_v33  ;;  %v1457_v20 = vmul.f32 0.0051020407, %v1402_v48  ;;  %v1536_v48 = vld [vmem:[%s3343_s19 + $0x8] sm:$0xff] }
 0x20d   : > { %v1294_v40 = vpop.xlane.xlu1 %1293 }
 0x20e   : > { %v1504_v30 = vadd.f32 1e-05, %v1488_v37  ;;  %v1489_v61 = vsub.f32 %v1457_v20, %v1473_v28  ;;  %v3333_v62 = vmul.f32 0.0051020407, %v1294_v40 }
 0x20f   : > { %v1298_v49 = vpop.xlane.xlu0 %1297 }
 0x210   : > { %1985 = vrsqrt.f32 %v1504_v30  ;;  %v1505_v25 = vadd.f32 1e-05, %v1489_v61  ;;  %v1474_v17 = vmul.f32 %v3333_v62, %v3333_v62  ;;  %v3345_v26 = vmul.f32 0.0051020407, %v1298_v49 }
 0x211   : > { %v1406_v23 = vpop.xlane.xlu1 %1405 }
 0x212   : > { %v1458_v31 = vmul.f32 0.0051020407, %v1406_v23  ;;  %1987 = vrsqrt.f32 %v1505_v25  ;;  %v1475_v54 = vmul.f32 %v3345_v26, %v3345_v26 }
 0x213   : > { %v1410_v50 = vpop.xlane.xlu0 %1409 }
 0x214   : > { %v1490_v43 = vsub.f32 %v1458_v31, %v1474_v17  ;;  %v1459_v63 = vmul.f32 0.0051020407, %v1410_v50  ;;  %v1568_v50 = vld [vmem:[%s3360_s21 + $0x8] sm:$0xff] }
 0x215   : > { %v1302_v60 = vpop.xlane.xlu1 %1301 }
 0x216   : > { %v1506_v8 = vadd.f32 1e-05, %v1490_v43  ;;  %v3347_v34 = vmul.f32 0.0051020407, %v1302_v60  ;;  %v1491_v55 = vsub.f32 %v1459_v63, %v1475_v54  ;;  %v1567_v43 = vld [vmem:[%s3360_s21] sm:$0xff] }
 0x217   : > { %v1984_v11 = vpop.eup %1983  ;;  %v1306_v51 = vpop.xlane.xlu0 %1305 }
 0x218   : > { %1989 = vrsqrt.f32 %v1506_v8  ;;  %v1551_v45 = vmul.f32 %v1984_v11, %v1535_v0  ;;  %v1476_v42 = vmul.f32 %v3347_v34, %v3347_v34  ;;  %v1507_v40 = vadd.f32 1e-05, %v1491_v55 }
 0x219   : > { %v1414_v15 = vpop.xlane.xlu1 %1413  ;;  %v3364_v17 = vmul.f32 0.0051020407, %v1306_v51 }
 0x21a   : > { %v1460_v46 = vmul.f32 0.0051020407, %v1414_v15  ;;  %1617 = vperm.xlu0 %1981, %v1551_v45   ;;  %v1583_v25 = vmul.f32 %v1551_v45, %v1343_v44  ;;  %v1537_v45 = vld [vmem:[%s3343_s19 + $0x10] sm:$0xff] }
 0x21b   : > { %v1418_v37 = vpop.xlane.xlu0 %1417  ;;  %v1477_v51 = vmul.f32 %v3364_v17, %v3364_v17 }
 0x21c   : > { %v1492_v28 = vsub.f32 %v1460_v46, %v1476_v42  ;;  %v1461_v60 = vmul.f32 0.0051020407, %v1418_v37  ;;  %v1599_v55 = vsub.f32 %v1567_v43, %v1583_v25  ;;  %v1538_v42 = vld [vmem:[%s3343_s19 + $0x18] sm:$0xff] }
 0x21d   : > { %v1986_v20 = vpop.eup %1985  ;;  %v1310_v30 = vpop.xlane.xlu1 %1309  ;;  %v1570_v25 = vld [vmem:[%s3360_s21 + $0x18] sm:$0xff] }
 0x21e   : > { %v1552_v61 = vmul.f32 %v1986_v20, %v1536_v48  ;;  %v1508_v49 = vadd.f32 1e-05, %v1492_v28  ;;  %v3362_v23 = vmul.f32 0.0051020407, %v1310_v30  ;;  %v1493_v48 = vsub.f32 %v1461_v60, %v1477_v51  ;;  %v1540_v51 = vld [vmem:[%s3343_s19 + $0x28] sm:$0xff] }
 0x21f   : > { %v1314_v31 = vpop.xlane.xlu0 %1313  ;;  %v1988_v44 = vpop.eup %1987 }
 0x220   : > { %v1584_v63 = vmul.f32 %v1552_v61, %v1344_v22  ;;  %1991 = vrsqrt.f32 %v1508_v49  ;;  %1622 = vperm.xlu1 %1982, %v1552_v61   ;;  %v1478_v0 = vmul.f32 %v3362_v23, %v3362_v23  ;;  %v3376_v61 = vmul.f32 0.0051020407, %v1314_v31 }
 0x221   : > { %1993 = vrsqrt.f32 %v1507_v40  ;;  %v1422_v8 = vpop.xlane.xlu1 %1421  ;;  %v1553_v40 = vmul.f32 %v1988_v44, %v1537_v45  ;;  %v1569_v44 = vld [vmem:[%s3360_s21 + $0x10] sm:$0xff] }
 0x222   : > { %v1462_v11 = vmul.f32 0.0051020407, %v1422_v8  ;;  %v1600_v54 = vsub.f32 %v1568_v50, %v1584_v63  ;;  %v1509_v50 = vadd.f32 1e-05, %v1493_v48  ;;  %v1479_v31 = vmul.f32 %v3376_v61, %v3376_v61 }
 0x223   : > { %v1426_v15 = vpop.xlane.xlu0 %1425 }
 0x224   : > { %v1494_v22 = vsub.f32 %v1462_v11, %v1478_v0  ;;  %1734 = vperm.xlu0 %1981, %v1600_v54   ;;  %1729 = vperm.xlu1 %1982, %v1599_v55   ;;  %v1463_v43 = vmul.f32 0.0051020407, %v1426_v15  ;;  %v1585_v11 = vmul.f32 %v1553_v40, %v3329_v33 }
 0x225   : > { %v1990_v46 = vpop.eup %1989  ;;  %v1318_v37 = vpop.xlane.xlu1 %1317 }
 0x226   : > { %v1510_v28 = vadd.f32 1e-05, %v1494_v22  ;;  %v3374_v20 = vmul.f32 0.0051020407, %v1318_v37  ;;  %v1554_v30 = vmul.f32 %v1990_v46, %v1538_v42  ;;  %v1601_v33 = vsub.f32 %v1569_v44, %v1585_v11  ;;  %v1542_v44 = vld [vmem:[%s3343_s19 + $0x38] sm:$0xff] }
 0x227   : > { %v1322_v49 = vpop.xlane.xlu0 %1321 }
 0x228   : > { %1995 = vrsqrt.f32 %v1510_v28  ;;  %1627 = vperm.xlu1 %1982, %v1553_v40   ;;  %v1586_v8 = vmul.f32 %v1554_v30, %v3333_v62  ;;  %v1480_v60 = vmul.f32 %v3374_v20, %v3374_v20  ;;  %v1495_v62 = vsub.f32 %v1463_v43, %v1479_v31  ;;  %v1539_v28 = vld [vmem:[%s3343_s19 + $0x20] sm:$0xff] }
 0x229   : > { %v1430_v63 = vpop.xlane.xlu1 %1429  ;;  %1997 = vrsqrt.f32 %v1509_v50 }
 0x22a   : > { %v1464_v0 = vmul.f32 0.0051020407, %v1430_v63  ;;  %v1602_v55 = vsub.f32 %v1570_v25, %v1586_v8  ;;  %v3390_v25 = vmul.f32 0.0051020407, %v1322_v49  ;;  %v1511_v63 = vadd.f32 1e-05, %v1495_v62 }
 0x22b   : > { %v1434_v54 = vpop.xlane.xlu0 %1433 }
 0x22c   : > { %v1496_v45 = vsub.f32 %v1464_v0, %v1480_v60  ;;  %1632 = vperm.xlu1 %1982, %v1554_v30   ;;  %1744 = vperm.xlu0 %1981, %v1602_v55   ;;  %v1572_v30 = vld [vmem:[%s3360_s21 + $0x28] sm:$0xff]  ;;  %v1465_v60 = vmul.f32 0.0051020407, %v1434_v54  ;;  %v1481_v49 = vmul.f32 %v3390_v25, %v3390_v25 }
 0x22d   : > { %v1992_v15 = vpop.eup %1991  ;;  %v1326_v42 = vpop.xlane.xlu1 %1325 }
 0x22e   : > { %v1994_v22 = vpop.eup %1993  ;;  %v1512_v46 = vadd.f32 1e-05, %v1496_v45  ;;  %v3387_v48 = vmul.f32 0.0051020407, %v1326_v42  ;;  %v1556_v37 = vmul.f32 %v1992_v15, %v1540_v51  ;;  %v1497_v15 = vsub.f32 %v1465_v60, %v1481_v49 }
 0x22f   : > { %v1330_v40 = vpop.xlane.xlu0 %1329  ;;  %v1555_v43 = vmul.f32 %v1994_v22, %v1539_v28  ;;  %v1574_v28 = vld [vmem:[%s3360_s21 + $0x38] sm:$0xff] }
 0x230   : > { %1999 = vrsqrt.f32 %v1512_v46  ;;  %1739 = vperm.xlu1 %1982, %v1601_v33   ;;  %v1588_v50 = vmul.f32 %v1556_v37, %v3347_v34  ;;  %v1482_v0 = vmul.f32 %v3387_v48, %v3387_v48  ;;  %v3402_v46 = vmul.f32 0.0051020407, %v1330_v40  ;;  %v1571_v33 = vld [vmem:[%s3360_s21 + $0x20] sm:$0xff] }
 0x231   : > { %v1438_v8 = vpop.xlane.xlu1 %1437  ;;  %2001 = vrsqrt.f32 %v1511_v63  ;;  %v1587_v54 = vmul.f32 %v1555_v43, %v3345_v26  ;;  %v1513_v26 = vadd.f32 1e-05, %v1497_v15 }
 0x232   : > { %v1466_v31 = vmul.f32 0.0051020407, %v1438_v8  ;;  %v1604_v55 = vsub.f32 %v1572_v30, %v1588_v50  ;;  %v1483_v40 = vmul.f32 %v3402_v46, %v3402_v46 }
 0x233   : > { %v1442_v11 = vpop.xlane.xlu0 %1441 }
 0x234   : > { %v1498_v51 = vsub.f32 %v1466_v31, %v1482_v0  ;;  %1637 = vperm.xlu1 %1982, %v1555_v43   ;;  %1754 = vperm.xlu0 %1981, %v1604_v55   ;;  %v1467_v30 = vmul.f32 0.0051020407, %v1442_v11  ;;  %v1603_v31 = vsub.f32 %v1571_v33, %v1587_v54  ;;  %v1541_v55 = vld [vmem:[%s3343_s19 + $0x30] sm:$0xff]  ;;  %v1576_v33 = vld [vmem:[%s3360_s21 + $0x48] sm:$0xff] }
 0x235   : > { %v1996_v45 = vpop.eup %1995  ;;  %v1334_v34 = vpop.xlane.xlu1 %1333 }
 0x236   : > { %v1514_v62 = vadd.f32 1e-05, %v1498_v51  ;;  %v3400_v42 = vmul.f32 0.0051020407, %v1334_v34  ;;  %v1558_v22 = vmul.f32 %v1996_v45, %v1542_v44  ;;  %v1998_v0 = vpop.eup %1997  ;;  %v1499_v51 = vsub.f32 %v1467_v30, %v1483_v40  ;;  %v1573_v40 = vld [vmem:[%s3360_s21 + $0x30] sm:$0xff] }
 0x237   : > { %v1338_v8 = vpop.xlane.xlu0 %1337  ;;  %v1557_v45 = vmul.f32 %v1998_v0, %v1541_v55 }
 0x238   : > { %2003 = vrsqrt.f32 %v1514_v62  ;;  %1642 = vperm.xlu1 %1982, %v1556_v37   ;;  %v1590_v50 = vmul.f32 %v1558_v22, %v3362_v23  ;;  %v1484_v43 = vmul.f32 %v3400_v42, %v3400_v42  ;;  %v1544_v37 = vld [vmem:[%s3343_s19 + $0x48] sm:$0xff]  ;;  %v1515_v30 = vadd.f32 1e-05, %v1499_v51 }
 0x239   : > { %v1446_v63 = vpop.xlane.xlu1 %1445  ;;  %2005 = vrsqrt.f32 %v1513_v26  ;;  %v1589_v0 = vmul.f32 %v1557_v45, %v3364_v17 }
 0x23a   : > { %v1468_v60 = vmul.f32 0.0051020407, %v1446_v63  ;;  %v1606_v44 = vsub.f32 %v1574_v28, %v1590_v50  ;;  %v3416_v63 = vmul.f32 0.0051020407, %v1338_v8  ;;  %v1543_v8 = vld [vmem:[%s3343_s19 + $0x40] sm:$0xff] }
 0x23b   : > { %v1450_v54 = vpop.xlane.xlu0 %1449  ;;  %v1605_v17 = vsub.f32 %v1573_v40, %v1589_v0  ;;  %v1575_v0 = vld [vmem:[%s3360_s21 + $0x40] sm:$0xff] }
 0x23c   : > { %v1500_v49 = vsub.f32 %v1468_v60, %v1484_v43  ;;  %1749 = vperm.xlu1 %1982, %v1603_v31   ;;  %1764 = vperm.xlu0 %1981, %v1606_v44   ;;  %v1469_v43 = vmul.f32 0.0051020407, %v1450_v54  ;;  %v1546_v44 = vld [vmem:[%s3343_s19 + $0x58] sm:$0xff] }
 0x23d   : > { %v2000_v11 = vpop.eup %1999  ;;  %v1342_v23 = vpop.xlane.xlu1 %1341 }
 0x23e   : > { %v1516_v34 = vadd.f32 1e-05, %v1500_v49  ;;  %v3413_v15 = vmul.f32 0.0051020407, %v1342_v23  ;;  %v1560_v62 = vmul.f32 %v2000_v11, %v1544_v37  ;;  %v2002_v26 = vpop.eup %2001  ;;  %v1485_v37 = vmul.f32 %v3416_v63, %v3416_v63 }
 0x23f   : > { %v1559_v11 = vmul.f32 %v2002_v26, %v1543_v8  ;;  %v1545_v26 = vld [vmem:[%s3343_s19 + $0x50] sm:$0xff] }
 0x240   : > { %2007 = vrsqrt.f32 %v1516_v34  ;;  %1647 = vperm.xlu1 %1982, %v1557_v45   ;;  %v1592_v28 = vmul.f32 %v1560_v62, %v3374_v20  ;;  %1662 = vperm.xlu0 %1981, %v1560_v62   ;;  %v1486_v60 = vmul.f32 %v3413_v15, %v3413_v15  ;;  %v1501_v51 = vsub.f32 %v1469_v43, %v1485_v37  ;;  %v1578_v34 = vld [vmem:[%s3360_s21 + $0x58] sm:$0xff] }
 0x241   : > { %v1454_v50 = vpop.xlane.xlu1 %1453  ;;  %2009 = vrsqrt.f32 %v1515_v30  ;;  %v1550_v37 = vld [vmem:[%s3343_s19 + $0x78] sm:$0xff] }
 0x242   : > { %v1470_v31 = vmul.f32 0.0051020407, %v1454_v50  ;;  %v1608_v55 = vsub.f32 %v1576_v33, %v1592_v28  ;;  %v1517_v54 = vadd.f32 1e-05, %v1501_v51  ;;  %v1591_v33 = vmul.f32 %v1559_v11, %v3376_v61  ;;  %v1548_v50 = vld [vmem:[%s3343_s19 + $0x68] sm:$0xff] }
 0x244   : > { %v1502_v20 = vsub.f32 %v1470_v31, %v1486_v60  ;;  %1652 = vperm.xlu1 %1982, %v1558_v22   ;;  %1774 = vperm.xlu0 %1981, %v1608_v55   ;;  %v1607_v60 = vsub.f32 %v1575_v0, %v1591_v33  ;;  %v1580_v31 = vld [vmem:[%s3360_s21 + $0x68] sm:$0xff] }
 0x245   : > { %v2004_v49 = vpop.eup %2003 }
 0x246   : > { %v1518_v23 = vadd.f32 1e-05, %v1502_v20  ;;  %v1562_v45 = vmul.f32 %v2004_v49, %v1546_v44  ;;  %v2006_v28 = vpop.eup %2005  ;;  %v1577_v44 = vld [vmem:[%s3360_s21 + $0x50] sm:$0xff]  ;;  %v1547_v20 = vld [vmem:[%s3343_s19 + $0x60] sm:$0xff] }
 0x248   : > { %2011 = vrsqrt.f32 %v1518_v23  ;;  %1759 = vperm.xlu1 %1982, %v1605_v17   ;;  %v1594_v62 = vmul.f32 %v1562_v45, %v3387_v48  ;;  %1672 = vperm.xlu0 %1981, %v1562_v45   ;;  %v1561_v48 = vmul.f32 %v2006_v28, %v1545_v26  ;;  %v1582_v23 = vld [vmem:[%s3360_s21 + $0x78] sm:$0xff] }
 0x249   : > { %2013 = vrsqrt.f32 %v1517_v54  ;;  %v1549_v54 = vld [vmem:[%s3343_s19 + $0x70] sm:$0xff] }
 0x24a   : > { %v1610_v22 = vsub.f32 %v1578_v34, %v1594_v62  ;;  %v1593_v40 = vmul.f32 %v1561_v48, %v3390_v25  ;;  %v1579_v62 = vld [vmem:[%s3360_s21 + $0x60] sm:$0xff] }
 0x24c   : > { %1657 = vperm.xlu1 %1982, %v1559_v11   ;;  %1784 = vperm.xlu0 %1981, %v1610_v22   ;;  %v1609_v17 = vsub.f32 %v1577_v44, %v1593_v40 }
 0x24d   : > { %v2008_v30 = vpop.eup %2007 }
 0x24e   : > { %v1564_v43 = vmul.f32 %v2008_v30, %v1548_v50  ;;  %v2010_v8 = vpop.eup %2009  ;;  %v1581_v50 = vld [vmem:[%s3360_s21 + $0x70] sm:$0xff] }
 0x24f   : > { %v1563_v51 = vmul.f32 %v2010_v8, %v1547_v20 }
 0x250   : > { %1769 = vperm.xlu1 %1982, %v1607_v60   ;;  %v1596_v55 = vmul.f32 %v1564_v43, %v3400_v42  ;;  %1682 = vperm.xlu0 %1981, %v1564_v43  }
 0x251   : > { %v1595_v25 = vmul.f32 %v1563_v51, %v3402_v46 }
 0x252   : > { %v1612_v61 = vsub.f32 %v1580_v31, %v1596_v55 }
 0x253   : > { %v1611_v22 = vsub.f32 %v1579_v62, %v1595_v25 }
 0x254   : > { %1667 = vperm.xlu1 %1982, %v1561_v48   ;;  %1794 = vperm.xlu0 %1981, %v1612_v61  }
 0x255   : > { %v2012_v49 = vpop.eup %2011 }
 0x256   : > { %v1566_v11 = vmul.f32 %v2012_v49, %v1550_v37  ;;  %v2014_v34 = vpop.eup %2013 }
 0x257   : > { %v1565_v33 = vmul.f32 %v2014_v34, %v1549_v54 }
 0x258   : > { %1779 = vperm.xlu1 %1982, %v1609_v17   ;;  %v1598_v42 = vmul.f32 %v1566_v11, %v3413_v15  ;;  %1692 = vperm.xlu0 %1981, %v1566_v11  }
 0x259   : > { %v1597_v28 = vmul.f32 %v1565_v33, %v3416_v63 }
 0x25a   : > { %v1614_v45 = vsub.f32 %v1582_v23, %v1598_v42 }
 0x25b   : > { %v1613_v0 = vsub.f32 %v1581_v50, %v1597_v28 }
 0x25c   : > { %1677 = vperm.xlu1 %1982, %v1563_v51   ;;  %1804 = vperm.xlu0 %1981, %v1614_v45  }
 0x260   : > { %1789 = vperm.xlu1 %1982, %v1611_v22  }
 0x264   : > { %1687 = vperm.xlu1 %1982, %v1565_v33  }
 0x268   : > { %1799 = vperm.xlu1 %1982, %v1613_v0  }
 0x295   : > { %v1618_v15 = vpop.permute.xlu0 %1617 }
 0x296   : > { %v1695_v46 = vmul.f32 %v1618_v15, %v3091_v1  ;;  %v1696_v30 = vmul.f32 %v1618_v15, %v3089_v32 }
 0x29b   : > { %v1623_v26 = vpop.permute.xlu1 %1622 }
 0x29c   : > { %v1697_v43 = vmul.f32 %v1623_v26, %v3097_v5  ;;  %v1698_v60 = vmul.f32 %v1623_v26, %v3102_v9 }
 0x29f   : > { %v1735_v63 = vpop.permute.xlu0 %1734  ;;  %v1730_v48 = vpop.permute.xlu1 %1729 }
 0x2a0   : > { %v1809_v31 = vadd.f32 %v1735_v63, %v1697_v43  ;;  %v1810_v55 = vadd.f32 %v1735_v63, %v1698_v60  ;;  %v1807_v1 = vadd.f32 %v1730_v48, %v1695_v46  ;;  %v1808_v32 = vadd.f32 %v1730_v48, %v1696_v30 }
 0x2a2   : > { %1841 = vst [vmem:[%s3454_s26 + $0x10] sm:$0xff] %v1809_v31  ;;  %1842 = vst.msk [vmem:[%s3454_s26 + $0x18] sm:$0xff] %vm1278_vm0, %v1810_v55 }
 0x2a3   : > { %1839 = vst [vmem:[%s3454_s26] sm:$0xff] %v1807_v1  ;;  %1840 = vst.msk [vmem:[%s3454_s26 + $0x8] sm:$0xff] %vm1278_vm0, %v1808_v32  ;;  %v1628_v5 = vpop.permute.xlu1 %1627 }
 0x2a4   : > { %v1699_v44 = vmul.f32 %v1628_v5, %v3119_v4  ;;  %v1700_v37 = vmul.f32 %v1628_v5, %v3114_v10 }
 0x2a7   : > { %v1633_v9 = vpop.permute.xlu1 %1632  ;;  %v1745_v8 = vpop.permute.xlu0 %1744 }
 0x2a8   : > { %v1701_v61 = vmul.f32 %v1633_v9, %v3141_v21  ;;  %v1702_v40 = vmul.f32 %v1633_v9, %v3131_v14 }
 0x2aa   : > { %v1813_v20 = vadd.f32 %v1745_v8, %v1701_v61  ;;  %v1814_v49 = vadd.f32 %v1745_v8, %v1702_v40 }
 0x2ab   : > { %v1740_v17 = vpop.permute.xlu1 %1739 }
 0x2ac   : > { %1845 = vst [vmem:[%s3454_s26 + $0x30] sm:$0xff] %v1813_v20  ;;  %1846 = vst.msk [vmem:[%s3454_s26 + $0x38] sm:$0xff] %vm1278_vm0, %v1814_v49  ;;  %v1811_v11 = vadd.f32 %v1740_v17, %v1699_v44  ;;  %v1812_v51 = vadd.f32 %v1740_v17, %v1700_v37 }
 0x2ae   : > { %1843 = vst [vmem:[%s3454_s26 + $0x20] sm:$0xff] %v1811_v11  ;;  %1844 = vst.msk [vmem:[%s3454_s26 + $0x28] sm:$0xff] %vm1278_vm0, %v1812_v51 }
 0x2af   : > { %v1638_v14 = vpop.permute.xlu1 %1637  ;;  %v1755_v4 = vpop.permute.xlu0 %1754 }
 0x2b0   : > { %v1703_v42 = vmul.f32 %v1638_v14, %v3147_v13  ;;  %v1704_v45 = vmul.f32 %v1638_v14, %v3145_v7 }
 0x2b3   : > { %v1643_v21 = vpop.permute.xlu1 %1642 }
 0x2b4   : > { %v1705_v10 = vmul.f32 %v1643_v21, %v3172_v29  ;;  %v1706_v23 = vmul.f32 %v1643_v21, %v3163_v18 }
 0x2b6   : > { %v1817_v25 = vadd.f32 %v1755_v4, %v1705_v10  ;;  %v1818_v34 = vadd.f32 %v1755_v4, %v1706_v23 }
 0x2b7   : > { %v1750_v62 = vpop.permute.xlu1 %1749  ;;  %v1765_v54 = vpop.permute.xlu0 %1764 }
 0x2b8   : > { %1849 = vst [vmem:[%s3454_s26 + $0x50] sm:$0xff] %v1817_v25  ;;  %1850 = vst.msk [vmem:[%s3454_s26 + $0x58] sm:$0xff] %vm1278_vm0, %v1818_v34  ;;  %v1815_v22 = vadd.f32 %v1750_v62, %v1703_v42  ;;  %v1816_v33 = vadd.f32 %v1750_v62, %v1704_v45 }
 0x2ba   : > { %1847 = vst [vmem:[%s3454_s26 + $0x40] sm:$0xff] %v1815_v22  ;;  %1848 = vst.msk [vmem:[%s3454_s26 + $0x48] sm:$0xff] %vm1278_vm0, %v1816_v33 }
 0x2bb   : > { %v1648_v29 = vpop.permute.xlu1 %1647  ;;  %v1663_v18 = vpop.permute.xlu0 %1662 }
 0x2bc   : > { %v1713_v13 = vmul.f32 %v1663_v18, %v3234_v47  ;;  %v1714_v7 = vmul.f32 %v1663_v18, %v3225_v12  ;;  %v1707_v30 = vmul.f32 %v1648_v29, %v3178_v59  ;;  %v1708_v43 = vmul.f32 %v1648_v29, %v3176_v58 }
 0x2bf   : > { %v1653_v28 = vpop.permute.xlu1 %1652  ;;  %v1775_v50 = vpop.permute.xlu0 %1774 }
 0x2c0   : > { %v1709_v0 = vmul.f32 %v1653_v28, %v3203_v38  ;;  %v1710_v15 = vmul.f32 %v1653_v28, %v3194_v19  ;;  %v1825_v26 = vadd.f32 %v1775_v50, %v1713_v13  ;;  %v1826_v46 = vadd.f32 %v1775_v50, %v1714_v7 }
 0x2c2   : > { %v1821_v60 = vadd.f32 %v1765_v54, %v1709_v0  ;;  %v1822_v63 = vadd.f32 %v1765_v54, %v1710_v15  ;;  %1857 = vst [vmem:[%s3454_s26 + $0x90] sm:$0xff] %v1825_v26  ;;  %1858 = vst.msk [vmem:[%s3454_s26 + $0x98] sm:$0xff] %vm1278_vm0, %v1826_v46 }
 0x2c3   : > { %v1760_v12 = vpop.permute.xlu1 %1759  ;;  %v1673_v38 = vpop.permute.xlu0 %1672 }
 0x2c4   : > { %1853 = vst [vmem:[%s3454_s26 + $0x70] sm:$0xff] %v1821_v60  ;;  %1854 = vst.msk [vmem:[%s3454_s26 + $0x78] sm:$0xff] %vm1278_vm0, %v1822_v63  ;;  %v1819_v19 = vadd.f32 %v1760_v12, %v1707_v30  ;;  %v1820_v47 = vadd.f32 %v1760_v12, %v1708_v43  ;;  %v1717_v58 = vmul.f32 %v1673_v38, %v3265_v56 }
 0x2c5   : > { %v1718_v59 = vmul.f32 %v1673_v38, %v3256_v35 }
 0x2c6   : > { %1851 = vst [vmem:[%s3454_s26 + $0x60] sm:$0xff] %v1819_v19  ;;  %1852 = vst.msk [vmem:[%s3454_s26 + $0x68] sm:$0xff] %vm1278_vm0, %v1820_v47 }
 0x2c7   : > { %v1658_v48 = vpop.permute.xlu1 %1657  ;;  %v1785_v31 = vpop.permute.xlu0 %1784 }
 0x2c8   : > { %v1829_v55 = vadd.f32 %v1785_v31, %v1717_v58  ;;  %v1830_v1 = vadd.f32 %v1785_v31, %v1718_v59  ;;  %v1711_v32 = vmul.f32 %v1658_v48, %v3209_v16  ;;  %v1712_v5 = vmul.f32 %v1658_v48, %v3207_v6 }
 0x2ca   : > { %1861 = vst [vmem:[%s3454_s26 + $0xb0] sm:$0xff] %v1829_v55  ;;  %1862 = vst.msk [vmem:[%s3454_s26 + $0xb8] sm:$0xff] %vm1278_vm0, %v1830_v1 }
 0x2cb   : > { %v1770_v9 = vpop.permute.xlu1 %1769  ;;  %v1683_v61 = vpop.permute.xlu0 %1682 }
 0x2cc   : > { %v1823_v40 = vadd.f32 %v1770_v9, %v1711_v32  ;;  %v1824_v8 = vadd.f32 %v1770_v9, %v1712_v5  ;;  %v1721_v35 = vmul.f32 %v1683_v61, %v3296_v2  ;;  %v1722_v16 = vmul.f32 %v1683_v61, %v3287_v53 }
 0x2ce   : > { %1855 = vst [vmem:[%s3454_s26 + $0x80] sm:$0xff] %v1823_v40  ;;  %1856 = vst.msk [vmem:[%s3454_s26 + $0x88] sm:$0xff] %vm1278_vm0, %v1824_v8 }
 0x2cf   : > { %v1668_v56 = vpop.permute.xlu1 %1667  ;;  %v1795_v6 = vpop.permute.xlu0 %1794 }
 0x2d0   : > { %v1833_v44 = vadd.f32 %v1795_v6, %v1721_v35  ;;  %v1834_v37 = vadd.f32 %v1795_v6, %v1722_v16  ;;  %v1715_v20 = vmul.f32 %v1668_v56, %v3240_v39  ;;  %v1716_v49 = vmul.f32 %v1668_v56, %v3238_v3 }
 0x2d2   : > { %1865 = vst [vmem:[%s3454_s26 + $0xd0] sm:$0xff] %v1833_v44  ;;  %1866 = vst.msk [vmem:[%s3454_s26 + $0xd8] sm:$0xff] %vm1278_vm0, %v1834_v37 }
 0x2d3   : > { %v1780_v17 = vpop.permute.xlu1 %1779  ;;  %v1693_v11 = vpop.permute.xlu0 %1692 }
 0x2d4   : > { %v1827_v51 = vadd.f32 %v1780_v17, %v1715_v20  ;;  %v1828_v14 = vadd.f32 %v1780_v17, %v1716_v49  ;;  %v1725_v53 = vmul.f32 %v1693_v11, %v3323_v52  ;;  %v1726_v39 = vmul.f32 %v1693_v11, %v3314_v41 }
 0x2d6   : > { %1859 = vst [vmem:[%s3454_s26 + $0xa0] sm:$0xff] %v1827_v51  ;;  %1860 = vst.msk [vmem:[%s3454_s26 + $0xa8] sm:$0xff] %vm1278_vm0, %v1828_v14 }
 0x2d7   : > { %v1678_v2 = vpop.permute.xlu1 %1677  ;;  %v1805_v3 = vpop.permute.xlu0 %1804 }
 0x2d8   : > { %v1837_v21 = vadd.f32 %v1805_v3, %v1725_v53  ;;  %v1838_v4 = vadd.f32 %v1805_v3, %v1726_v39  ;;  %v1719_v10 = vmul.f32 %v1678_v2, %v3271_v36  ;;  %v1720_v23 = vmul.f32 %v1678_v2, %v3269_v24 }
 0x2da   : > { %1869 = vst [vmem:[%s3454_s26 + $0xf0] sm:$0xff] %v1837_v21  ;;  %1870 = vst.msk [vmem:[%s3454_s26 + $0xf8] sm:$0xff] %vm1278_vm0, %v1838_v4 }
 0x2db   : > { %v1790_v42 = vpop.permute.xlu1 %1789 }
 0x2dc   : > { %v1831_v45 = vadd.f32 %v1790_v42, %v1719_v10  ;;  %v1832_v25 = vadd.f32 %v1790_v42, %v1720_v23 }
 0x2de   : > { %1863 = vst [vmem:[%s3454_s26 + $0xc0] sm:$0xff] %v1831_v45  ;;  %1864 = vst.msk [vmem:[%s3454_s26 + $0xc8] sm:$0xff] %vm1278_vm0, %v1832_v25 }
 0x2df   : > { %v1688_v41 = vpop.permute.xlu1 %1687 }
 0x2e0   : > { %v1723_v52 = vmul.f32 %v1688_v41, %v3302_v57  ;;  %v1724_v34 = vmul.f32 %v1688_v41, %v3300_v27 }
 0x2e3   : > { %v1800_v62 = vpop.permute.xlu1 %1799 }
 0x2e4   : > { %v1835_v54 = vadd.f32 %v1800_v62, %v1723_v52  ;;  %v1836_v36 = vadd.f32 %v1800_v62, %v1724_v34 }
 0x2e6   : > { %1867 = vst [vmem:[%s3454_s26 + $0xe0] sm:$0xff] %v1835_v54  ;;  %1868 = vst.msk [vmem:[%s3454_s26 + $0xe8] sm:$0xff] %vm1278_vm0, %v1836_v36 }
 0x2e7 PF: > { %s14_s15 = sadd.s32 1, %s2021_s15  }
 0x2e8   : > { %p11_p4 = scmp.ge.s32.totalorder %s14_s15, 4  }
 0x2ea   :  { %13 = sbr.rel (!%p11_p4) target bundleno = 1 (0x1), region = 72 }

</bundles_post_ra>
